<compile_context>
chip_gen: v7x
topology: tpu7x:2x2x1
jax: 0.10.0
libtpu: 0.0.40
codegen_flags: <defaults>
</compile_context>

<pallas_src>
import jax
import jax.numpy as jnp
from jax.experimental import pallas as pl
from jax.experimental.pallas import tpu as pltpu


def _rk4_traj_kernel(coef_ref,          # SMEM (3*T,) f32: [dt/2, dt, dt/6] per interval
                     y0_ref,            # VMEM (TN, D) f32  initial state block
                     w1_ref, b1_ref,    # VMEM (D, H) f32, (1, H) f32
                     w2_ref, b2_ref,    # VMEM (H, D) f32, (1, D) f32
                     out_ref):          # VMEM (TN, T*D) f32 trajectory slab block
    TN, D = y0_ref.shape
    H = w1_ref.shape[1]
    T = out_ref.shape[1] // D

    # Hoist weight reads and bias broadcasts once (JAX does not CSE broadcast_in_dim,
    # so leaving these inside f() would re-emit them 4x per RK4 step).
    w1 = w1_ref[...]                                    # (D, H) f32
    w2 = w2_ref[...]                                    # (H, D) f32
    b1 = jnp.broadcast_to(b1_ref[...], (TN, H))         # (TN, H) f32
    b2 = jnp.broadcast_to(b2_ref[...], (TN, D))         # (TN, D) f32

    def f(y):
        # f32 MXU matmuls + f32 tanh (EUP) + f32 RK4 arithmetic: no per-stage bf16
        # rounding injected into the drift.
        h = jnp.tanh(jnp.dot(y, w1, preferred_element_type=jnp.float32) + b1)
        return jnp.dot(h, w2, preferred_element_type=jnp.float32) + b2

    def rk4_step(y, i):
        # Precomputed scalars from SMEM (static index): no per-step divide/multiply on
        # the scalar slots of the serial critical path.
        half_dt = coef_ref[3 * i + 0]
        dt = coef_ref[3 * i + 1]
        dt_6 = coef_ref[3 * i + 2]
        k1 = f(y)
        k2 = f(y + half_dt * k1)
        k3 = f(y + half_dt * k2)
        k4 = f(y + dt * k3)
        return y + dt_6 * (k1 + 2.0 * (k2 + k3) + k4)

    # Store-batching group size: accumulate G consecutive timesteps (G*D = 128 lanes)
    # and issue one unmasked, 128-lane-aligned store per group instead of per-step
    # masked vst.msk partial stores.
    if D < 128 and 128 % D == 0:
        G = 128 // D
    else:
        G = 1

    y = y0_ref[...].astype(jnp.float32)

    # First interval is [0, t0]; dt==0 when t0==0, which leaves y0 unchanged exactly —
    # this reproduces the module's zero-padding branch for time_steps[0] != 0.
    group = []
    for t in range(T):                        # T is static; fully unrolled time loop
        y = rk4_step(y, t)
        group.append(y)
        if len(group) == G or t == T - 1:
            start = (t + 1 - len(group)) * D  # multiple of 128 for full groups
            out_ref[:, start:start + len(group) * D] = (
                jnp.concatenate(group, axis=1).astype(out_ref.dtype))
            group = []


def diffeq_solver_forward(first_point, time_steps_to_predict, params, *,
                          block_rows=None):
    """Pallas equivalent of DiffeqSolver.forward (fixed-grid RK4, tanh-MLP ode_func).

    first_point:            (n_traj_samples, n_traj, n_dims)
    time_steps_to_predict:  (T,)
    returns pred_y:         (n_traj_samples, n_traj, T, n_dims) float32
    """
    w1, b1, w2, b2 = params
    S, B, D = first_point.shape
    H = w1.shape[1]
    N = S * B
    T = int(time_steps_to_predict.shape[0])

    # Per-interval RK4 coefficients (dt/2, dt, dt/6), with the first interval being
    # [0, t0] so first_point is the state at t=0 (matches the module's padding branch).
    ts = time_steps_to_predict.astype(jnp.float32)
    t_prev = jnp.concatenate([jnp.zeros((1,), jnp.float32), ts[:-1]])
    dt = ts - t_prev
    coef = jnp.stack([0.5 * dt, dt, dt / 6.0], axis=1).reshape(-1)   # (3*T,)

    # Sublane-align the trajectory rows and pick an N-block that keeps double-buffered
    # y0 + output blocks under ~24 MiB (safe for v7x's 64 MiB VMEM; generous on v5e/v6e).
    N8 = ((N + 7) // 8) * 8
    if block_rows is None:
        budget = 24 * 1024 * 1024
        per_row = 2 * (D + T * D) * 4                     # double-buffered f32 rows
        block_rows = max(8, min(N8, (budget // per_row) // 8 * 8))
    TN = int(block_rows)
    N_pad = ((N8 + TN - 1) // TN) * TN

    y0 = first_point.reshape(N, D).astype(jnp.float32)
    y0 = jnp.pad(y0, ((0, N_pad - N), (0, 0)))

    w1f = w1.astype(jnp.float32)
    b1f = b1.reshape(1, H).astype(jnp.float32)
    w2f = w2.astype(jnp.float32)
    b2f = b2.reshape(1, D).astype(jnp.float32)

    block_bytes = 2 * (TN * D * 4 + TN * T * D * 4)       # double-buffered blocks
    weight_bytes = (D * H + H + H * D + D) * 4
    vmem_limit = int(min(max(block_bytes + weight_bytes + (2 << 20), 16 << 20),
                         48 << 20))

    traj = pl.pallas_call(
        _rk4_traj_kernel,
        out_shape=jax.ShapeDtypeStruct((N_pad, T * D), jnp.float32),
        grid=(N_pad // TN,),
        in_specs=[
            pl.BlockSpec(memory_space=pltpu.MemorySpace.SMEM),   # coef (scalars)
            pl.BlockSpec((TN, D), lambda i: (i, 0)),             # y0 block
            pl.BlockSpec((D, H), lambda i: (0, 0)),              # w1 (VMEM-resident)
            pl.BlockSpec((1, H), lambda i: (0, 0)),              # b1
            pl.BlockSpec((H, D), lambda i: (0, 0)),              # w2 (VMEM-resident)
            pl.BlockSpec((1, D), lambda i: (0, 0)),              # b2
        ],
        out_specs=pl.BlockSpec((TN, T * D), lambda i: (i, 0)),
        compiler_params=pltpu.CompilerParams(
            dimension_semantics=("parallel",),                   # engages v7x's 2nd TC
            vmem_limit_bytes=vmem_limit,
        ),
    )(coef, y0, w1f, b1f, w2f, b2f)

    # (N_pad, T*D) -> slice padding -> (S, B, T, D): pure contiguous reshape, no permute.
    return traj[:N].reshape(S, B, T, D)


def _init_ode_func_params(key, n_dims, n_hidden):
    """Deterministic init of the tanh-MLP ode_func: f(y) = tanh(y@W1+b1)@W2 + b2."""
    k1, k2 = jax.random.split(key)
    scale1 = 1.0 / jnp.sqrt(jnp.float32(n_dims))
    scale2 = 1.0 / jnp.sqrt(jnp.float32(n_hidden))
    w1 = jax.random.normal(k1, (n_dims, n_hidden), jnp.float32) * scale1
    b1 = jnp.zeros((1, n_hidden), jnp.float32)
    w2 = jax.random.normal(k2, (n_hidden, n_dims), jnp.float32) * scale2
    b2 = jnp.zeros((1, n_dims), jnp.float32)
    return (w1, b1, w2, b2)


if __name__ == "__main__":
    key = jax.random.PRNGKey(0)
    k_params, k_y0 = jax.random.split(key)

    n_traj_samples, n_traj, n_dims = 2, 8, 32   # N = 16 trajectories, latent dim 32
    n_hidden = 64
    T = 8

    params = _init_ode_func_params(k_params, n_dims, n_hidden)
    first_point = jax.random.normal(
        k_y0, (n_traj_samples, n_traj, n_dims), jnp.float32
    )
    time_steps = jnp.linspace(0.0, 1.0, T, dtype=jnp.float32)

    pred_y = diffeq_solver_forward(first_point, time_steps, params)
    pred_y = jax.block_until_ready(pred_y)

    # Same sanity checks as the PyTorch forward.
    assert pred_y.shape == (n_traj_samples, n_traj, T, n_dims)
    assert float(jnp.abs(jnp.mean(pred_y[:, :, 0, :] - first_point))) < 1e-3
    assert bool(jnp.all(jnp.isfinite(pred_y)))

    print("KERNEL_OK")
</pallas_src>

<mosaic_0001>
module attributes {stable_mosaic.version = 11 : i64} {
  func.func @_rk4_traj_kernel(%arg0: i32, %arg1: memref<24xf32, #tpu.memory_space<smem>>, %arg2: memref<16x32xf32, #tpu.memory_space<vmem>>, %arg3: memref<32x64xf32, #tpu.memory_space<vmem>>, %arg4: memref<1x64xf32, #tpu.memory_space<vmem>>, %arg5: memref<64x32xf32, #tpu.memory_space<vmem>>, %arg6: memref<1x32xf32, #tpu.memory_space<vmem>>, %arg7: memref<16x256xf32, #tpu.memory_space<vmem>>) attributes {dimension_semantics = [#tpu.dimension_semantics<parallel>], iteration_bounds = array<i64: 1>, scalar_prefetch = 0 : i64, scratch_operands = 0 : i64, tpu.core_type = #tpu.core_type<tc>, window_params = [{transform_indices = @transform_0, window_bounds = array<i64: 24>}, {transform_indices = @transform_1, window_bounds = array<i64: 16, 32>}, {pipeline_mode = #tpu.pipeline_mode<synchronous>, transform_indices = @transform_2, window_bounds = array<i64: 32, 64>}, {pipeline_mode = #tpu.pipeline_mode<synchronous>, transform_indices = @transform_3, window_bounds = array<i64: 1, 64>}, {pipeline_mode = #tpu.pipeline_mode<synchronous>, transform_indices = @transform_4, window_bounds = array<i64: 64, 32>}, {pipeline_mode = #tpu.pipeline_mode<synchronous>, transform_indices = @transform_5, window_bounds = array<i64: 1, 32>}, {transform_indices = @transform_6, window_bounds = array<i64: 16, 256>}]} {
    %c0 = arith.constant 0 : index
    %c0_0 = arith.constant 0 : index
    %0 = vector.load %arg3[%c0, %c0_0] : memref<32x64xf32, #tpu.memory_space<vmem>>, vector<32x64xf32>
    %c0_1 = arith.constant 0 : index
    %c0_2 = arith.constant 0 : index
    %1 = vector.load %arg5[%c0_1, %c0_2] : memref<64x32xf32, #tpu.memory_space<vmem>>, vector<64x32xf32>
    %c0_3 = arith.constant 0 : index
    %c0_4 = arith.constant 0 : index
    %2 = vector.load %arg4[%c0_3, %c0_4] : memref<1x64xf32, #tpu.memory_space<vmem>>, vector<1x64xf32>
    %3 = vector.shape_cast %2 : vector<1x64xf32> to vector<1x64xf32>
    %4 = vector.broadcast %3 : vector<1x64xf32> to vector<16x64xf32>
    %c0_5 = arith.constant 0 : index
    %c0_6 = arith.constant 0 : index
    %5 = vector.load %arg6[%c0_5, %c0_6] : memref<1x32xf32, #tpu.memory_space<vmem>>, vector<1x32xf32>
    %6 = vector.shape_cast %5 : vector<1x32xf32> to vector<1x32xf32>
    %7 = vector.broadcast %6 : vector<1x32xf32> to vector<16x32xf32>
    %c0_7 = arith.constant 0 : index
    %c0_8 = arith.constant 0 : index
    %8 = vector.load %arg2[%c0_7, %c0_8] : memref<16x32xf32, #tpu.memory_space<vmem>>, vector<16x32xf32>
    %c0_9 = arith.constant 0 : index
    %9 = memref.load %arg1[%c0_9] : memref<24xf32, #tpu.memory_space<smem>>
    %c1 = arith.constant 1 : index
    %10 = memref.load %arg1[%c1] : memref<24xf32, #tpu.memory_space<smem>>
    %c2 = arith.constant 2 : index
    %11 = memref.load %arg1[%c2] : memref<24xf32, #tpu.memory_space<smem>>
    %cst = arith.constant dense<0.000000e+00> : vector<16x64xf32>
    %12 = tpu.matmul %8, %0, %cst {dimension_numbers = #tpu.dot_dimension_numbers<[1], [0], [0], [1], [0, 0, 1, 1], [], []>} : vector<16x32xf32>, vector<32x64xf32>, vector<16x64xf32> -> vector<16x64xf32>
    %13 = arith.addf %12, %4 : vector<16x64xf32>
    %14 = math.tanh %13 : vector<16x64xf32>
    %cst_10 = arith.constant dense<0.000000e+00> : vector<16x32xf32>
    %15 = tpu.matmul %14, %1, %cst_10 {dimension_numbers = #tpu.dot_dimension_numbers<[1], [0], [0], [1], [0, 0, 1, 1], [], []>} : vector<16x64xf32>, vector<64x32xf32>, vector<16x32xf32> -> vector<16x32xf32>
    %16 = arith.addf %15, %7 : vector<16x32xf32>
    %17 = vector.broadcast %9 : f32 to vector<16x32xf32>
    %18 = arith.mulf %17, %16 : vector<16x32xf32>
    %19 = arith.addf %8, %18 : vector<16x32xf32>
    %cst_11 = arith.constant dense<0.000000e+00> : vector<16x64xf32>
    %20 = tpu.matmul %19, %0, %cst_11 {dimension_numbers = #tpu.dot_dimension_numbers<[1], [0], [0], [1], [0, 0, 1, 1], [], []>} : vector<16x32xf32>, vector<32x64xf32>, vector<16x64xf32> -> vector<16x64xf32>
    %21 = arith.addf %20, %4 : vector<16x64xf32>
    %22 = math.tanh %21 : vector<16x64xf32>
    %cst_12 = arith.constant dense<0.000000e+00> : vector<16x32xf32>
    %23 = tpu.matmul %22, %1, %cst_12 {dimension_numbers = #tpu.dot_dimension_numbers<[1], [0], [0], [1], [0, 0, 1, 1], [], []>} : vector<16x64xf32>, vector<64x32xf32>, vector<16x32xf32> -> vector<16x32xf32>
    %24 = arith.addf %23, %7 : vector<16x32xf32>
    %25 = vector.broadcast %9 : f32 to vector<16x32xf32>
    %26 = arith.mulf %25, %24 : vector<16x32xf32>
    %27 = arith.addf %8, %26 : vector<16x32xf32>
    %cst_13 = arith.constant dense<0.000000e+00> : vector<16x64xf32>
    %28 = tpu.matmul %27, %0, %cst_13 {dimension_numbers = #tpu.dot_dimension_numbers<[1], [0], [0], [1], [0, 0, 1, 1], [], []>} : vector<16x32xf32>, vector<32x64xf32>, vector<16x64xf32> -> vector<16x64xf32>
    %29 = arith.addf %28, %4 : vector<16x64xf32>
    %30 = math.tanh %29 : vector<16x64xf32>
    %cst_14 = arith.constant dense<0.000000e+00> : vector<16x32xf32>
    %31 = tpu.matmul %30, %1, %cst_14 {dimension_numbers = #tpu.dot_dimension_numbers<[1], [0], [0], [1], [0, 0, 1, 1], [], []>} : vector<16x64xf32>, vector<64x32xf32>, vector<16x32xf32> -> vector<16x32xf32>
    %32 = arith.addf %31, %7 : vector<16x32xf32>
    %33 = vector.broadcast %10 : f32 to vector<16x32xf32>
    %34 = arith.mulf %33, %32 : vector<16x32xf32>
    %35 = arith.addf %8, %34 : vector<16x32xf32>
    %cst_15 = arith.constant dense<0.000000e+00> : vector<16x64xf32>
    %36 = tpu.matmul %35, %0, %cst_15 {dimension_numbers = #tpu.dot_dimension_numbers<[1], [0], [0], [1], [0, 0, 1, 1], [], []>} : vector<16x32xf32>, vector<32x64xf32>, vector<16x64xf32> -> vector<16x64xf32>
    %37 = arith.addf %36, %4 : vector<16x64xf32>
    %38 = math.tanh %37 : vector<16x64xf32>
    %cst_16 = arith.constant dense<0.000000e+00> : vector<16x32xf32>
    %39 = tpu.matmul %38, %1, %cst_16 {dimension_numbers = #tpu.dot_dimension_numbers<[1], [0], [0], [1], [0, 0, 1, 1], [], []>} : vector<16x64xf32>, vector<64x32xf32>, vector<16x32xf32> -> vector<16x32xf32>
    %40 = arith.addf %39, %7 : vector<16x32xf32>
    %41 = arith.addf %24, %32 : vector<16x32xf32>
    %cst_17 = arith.constant 2.000000e+00 : f32
    %42 = vector.broadcast %cst_17 : f32 to vector<16x32xf32>
    %43 = arith.mulf %42, %41 : vector<16x32xf32>
    %44 = arith.addf %16, %43 : vector<16x32xf32>
    %45 = arith.addf %44, %40 : vector<16x32xf32>
    %46 = vector.broadcast %11 : f32 to vector<16x32xf32>
    %47 = arith.mulf %46, %45 : vector<16x32xf32>
    %48 = arith.addf %8, %47 : vector<16x32xf32>
    %c3 = arith.constant 3 : index
    %49 = memref.load %arg1[%c3] : memref<24xf32, #tpu.memory_space<smem>>
    %c4 = arith.constant 4 : index
    %50 = memref.load %arg1[%c4] : memref<24xf32, #tpu.memory_space<smem>>
    %c5 = arith.constant 5 : index
    %51 = memref.load %arg1[%c5] : memref<24xf32, #tpu.memory_space<smem>>
    %cst_18 = arith.constant dense<0.000000e+00> : vector<16x64xf32>
    %52 = tpu.matmul %48, %0, %cst_18 {dimension_numbers = #tpu.dot_dimension_numbers<[1], [0], [0], [1], [0, 0, 1, 1], [], []>} : vector<16x32xf32>, vector<32x64xf32>, vector<16x64xf32> -> vector<16x64xf32>
    %53 = arith.addf %52, %4 : vector<16x64xf32>
    %54 = math.tanh %53 : vector<16x64xf32>
    %cst_19 = arith.constant dense<0.000000e+00> : vector<16x32xf32>
    %55 = tpu.matmul %54, %1, %cst_19 {dimension_numbers = #tpu.dot_dimension_numbers<[1], [0], [0], [1], [0, 0, 1, 1], [], []>} : vector<16x64xf32>, vector<64x32xf32>, vector<16x32xf32> -> vector<16x32xf32>
    %56 = arith.addf %55, %7 : vector<16x32xf32>
    %57 = vector.broadcast %49 : f32 to vector<16x32xf32>
    %58 = arith.mulf %57, %56 : vector<16x32xf32>
    %59 = arith.addf %48, %58 : vector<16x32xf32>
    %cst_20 = arith.constant dense<0.000000e+00> : vector<16x64xf32>
    %60 = tpu.matmul %59, %0, %cst_20 {dimension_numbers = #tpu.dot_dimension_numbers<[1], [0], [0], [1], [0, 0, 1, 1], [], []>} : vector<16x32xf32>, vector<32x64xf32>, vector<16x64xf32> -> vector<16x64xf32>
    %61 = arith.addf %60, %4 : vector<16x64xf32>
    %62 = math.tanh %61 : vector<16x64xf32>
    %cst_21 = arith.constant dense<0.000000e+00> : vector<16x32xf32>
    %63 = tpu.matmul %62, %1, %cst_21 {dimension_numbers = #tpu.dot_dimension_numbers<[1], [0], [0], [1], [0, 0, 1, 1], [], []>} : vector<16x64xf32>, vector<64x32xf32>, vector<16x32xf32> -> vector<16x32xf32>
    %64 = arith.addf %63, %7 : vector<16x32xf32>
    %65 = vector.broadcast %49 : f32 to vector<16x32xf32>
    %66 = arith.mulf %65, %64 : vector<16x32xf32>
    %67 = arith.addf %48, %66 : vector<16x32xf32>
    %cst_22 = arith.constant dense<0.000000e+00> : vector<16x64xf32>
    %68 = tpu.matmul %67, %0, %cst_22 {dimension_numbers = #tpu.dot_dimension_numbers<[1], [0], [0], [1], [0, 0, 1, 1], [], []>} : vector<16x32xf32>, vector<32x64xf32>, vector<16x64xf32> -> vector<16x64xf32>
    %69 = arith.addf %68, %4 : vector<16x64xf32>
    %70 = math.tanh %69 : vector<16x64xf32>
    %cst_23 = arith.constant dense<0.000000e+00> : vector<16x32xf32>
    %71 = tpu.matmul %70, %1, %cst_23 {dimension_numbers = #tpu.dot_dimension_numbers<[1], [0], [0], [1], [0, 0, 1, 1], [], []>} : vector<16x64xf32>, vector<64x32xf32>, vector<16x32xf32> -> vector<16x32xf32>
    %72 = arith.addf %71, %7 : vector<16x32xf32>
    %73 = vector.broadcast %50 : f32 to vector<16x32xf32>
    %74 = arith.mulf %73, %72 : vector<16x32xf32>
    %75 = arith.addf %48, %74 : vector<16x32xf32>
    %cst_24 = arith.constant dense<0.000000e+00> : vector<16x64xf32>
    %76 = tpu.matmul %75, %0, %cst_24 {dimension_numbers = #tpu.dot_dimension_numbers<[1], [0], [0], [1], [0, 0, 1, 1], [], []>} : vector<16x32xf32>, vector<32x64xf32>, vector<16x64xf32> -> vector<16x64xf32>
    %77 = arith.addf %76, %4 : vector<16x64xf32>
    %78 = math.tanh %77 : vector<16x64xf32>
    %cst_25 = arith.constant dense<0.000000e+00> : vector<16x32xf32>
    %79 = tpu.matmul %78, %1, %cst_25 {dimension_numbers = #tpu.dot_dimension_numbers<[1], [0], [0], [1], [0, 0, 1, 1], [], []>} : vector<16x64xf32>, vector<64x32xf32>, vector<16x32xf32> -> vector<16x32xf32>
    %80 = arith.addf %79, %7 : vector<16x32xf32>
    %81 = arith.addf %64, %72 : vector<16x32xf32>
    %cst_26 = arith.constant 2.000000e+00 : f32
    %82 = vector.broadcast %cst_26 : f32 to vector<16x32xf32>
    %83 = arith.mulf %82, %81 : vector<16x32xf32>
    %84 = arith.addf %56, %83 : vector<16x32xf32>
    %85 = arith.addf %84, %80 : vector<16x32xf32>
    %86 = vector.broadcast %51 : f32 to vector<16x32xf32>
    %87 = arith.mulf %86, %85 : vector<16x32xf32>
    %88 = arith.addf %48, %87 : vector<16x32xf32>
    %c6 = arith.constant 6 : index
    %89 = memref.load %arg1[%c6] : memref<24xf32, #tpu.memory_space<smem>>
    %c7 = arith.constant 7 : index
    %90 = memref.load %arg1[%c7] : memref<24xf32, #tpu.memory_space<smem>>
    %c8 = arith.constant 8 : index
    %91 = memref.load %arg1[%c8] : memref<24xf32, #tpu.memory_space<smem>>
    %cst_27 = arith.constant dense<0.000000e+00> : vector<16x64xf32>
    %92 = tpu.matmul %88, %0, %cst_27 {dimension_numbers = #tpu.dot_dimension_numbers<[1], [0], [0], [1], [0, 0, 1, 1], [], []>} : vector<16x32xf32>, vector<32x64xf32>, vector<16x64xf32> -> vector<16x64xf32>
    %93 = arith.addf %92, %4 : vector<16x64xf32>
    %94 = math.tanh %93 : vector<16x64xf32>
    %cst_28 = arith.constant dense<0.000000e+00> : vector<16x32xf32>
    %95 = tpu.matmul %94, %1, %cst_28 {dimension_numbers = #tpu.dot_dimension_numbers<[1], [0], [0], [1], [0, 0, 1, 1], [], []>} : vector<16x64xf32>, vector<64x32xf32>, vector<16x32xf32> -> vector<16x32xf32>
    %96 = arith.addf %95, %7 : vector<16x32xf32>
    %97 = vector.broadcast %89 : f32 to vector<16x32xf32>
    %98 = arith.mulf %97, %96 : vector<16x32xf32>
    %99 = arith.addf %88, %98 : vector<16x32xf32>
    %cst_29 = arith.constant dense<0.000000e+00> : vector<16x64xf32>
    %100 = tpu.matmul %99, %0, %cst_29 {dimension_numbers = #tpu.dot_dimension_numbers<[1], [0], [0], [1], [0, 0, 1, 1], [], []>} : vector<16x32xf32>, vector<32x64xf32>, vector<16x64xf32> -> vector<16x64xf32>
    %101 = arith.addf %100, %4 : vector<16x64xf32>
    %102 = math.tanh %101 : vector<16x64xf32>
    %cst_30 = arith.constant dense<0.000000e+00> : vector<16x32xf32>
    %103 = tpu.matmul %102, %1, %cst_30 {dimension_numbers = #tpu.dot_dimension_numbers<[1], [0], [0], [1], [0, 0, 1, 1], [], []>} : vector<16x64xf32>, vector<64x32xf32>, vector<16x32xf32> -> vector<16x32xf32>
    %104 = arith.addf %103, %7 : vector<16x32xf32>
    %105 = vector.broadcast %89 : f32 to vector<16x32xf32>
    %106 = arith.mulf %105, %104 : vector<16x32xf32>
    %107 = arith.addf %88, %106 : vector<16x32xf32>
    %cst_31 = arith.constant dense<0.000000e+00> : vector<16x64xf32>
    %108 = tpu.matmul %107, %0, %cst_31 {dimension_numbers = #tpu.dot_dimension_numbers<[1], [0], [0], [1], [0, 0, 1, 1], [], []>} : vector<16x32xf32>, vector<32x64xf32>, vector<16x64xf32> -> vector<16x64xf32>
    %109 = arith.addf %108, %4 : vector<16x64xf32>
    %110 = math.tanh %109 : vector<16x64xf32>
    %cst_32 = arith.constant dense<0.000000e+00> : vector<16x32xf32>
    %111 = tpu.matmul %110, %1, %cst_32 {dimension_numbers = #tpu.dot_dimension_numbers<[1], [0], [0], [1], [0, 0, 1, 1], [], []>} : vector<16x64xf32>, vector<64x32xf32>, vector<16x32xf32> -> vector<16x32xf32>
    %112 = arith.addf %111, %7 : vector<16x32xf32>
    %113 = vector.broadcast %90 : f32 to vector<16x32xf32>
    %114 = arith.mulf %113, %112 : vector<16x32xf32>
    %115 = arith.addf %88, %114 : vector<16x32xf32>
    %cst_33 = arith.constant dense<0.000000e+00> : vector<16x64xf32>
    %116 = tpu.matmul %115, %0, %cst_33 {dimension_numbers = #tpu.dot_dimension_numbers<[1], [0], [0], [1], [0, 0, 1, 1], [], []>} : vector<16x32xf32>, vector<32x64xf32>, vector<16x64xf32> -> vector<16x64xf32>
    %117 = arith.addf %116, %4 : vector<16x64xf32>
    %118 = math.tanh %117 : vector<16x64xf32>
    %cst_34 = arith.constant dense<0.000000e+00> : vector<16x32xf32>
    %119 = tpu.matmul %118, %1, %cst_34 {dimension_numbers = #tpu.dot_dimension_numbers<[1], [0], [0], [1], [0, 0, 1, 1], [], []>} : vector<16x64xf32>, vector<64x32xf32>, vector<16x32xf32> -> vector<16x32xf32>
    %120 = arith.addf %119, %7 : vector<16x32xf32>
    %121 = arith.addf %104, %112 : vector<16x32xf32>
    %cst_35 = arith.constant 2.000000e+00 : f32
    %122 = vector.broadcast %cst_35 : f32 to vector<16x32xf32>
    %123 = arith.mulf %122, %121 : vector<16x32xf32>
    %124 = arith.addf %96, %123 : vector<16x32xf32>
    %125 = arith.addf %124, %120 : vector<16x32xf32>
    %126 = vector.broadcast %91 : f32 to vector<16x32xf32>
    %127 = arith.mulf %126, %125 : vector<16x32xf32>
    %128 = arith.addf %88, %127 : vector<16x32xf32>
    %c9 = arith.constant 9 : index
    %129 = memref.load %arg1[%c9] : memref<24xf32, #tpu.memory_space<smem>>
    %c10 = arith.constant 10 : index
    %130 = memref.load %arg1[%c10] : memref<24xf32, #tpu.memory_space<smem>>
    %c11 = arith.constant 11 : index
    %131 = memref.load %arg1[%c11] : memref<24xf32, #tpu.memory_space<smem>>
    %cst_36 = arith.constant dense<0.000000e+00> : vector<16x64xf32>
    %132 = tpu.matmul %128, %0, %cst_36 {dimension_numbers = #tpu.dot_dimension_numbers<[1], [0], [0], [1], [0, 0, 1, 1], [], []>} : vector<16x32xf32>, vector<32x64xf32>, vector<16x64xf32> -> vector<16x64xf32>
    %133 = arith.addf %132, %4 : vector<16x64xf32>
    %134 = math.tanh %133 : vector<16x64xf32>
    %cst_37 = arith.constant dense<0.000000e+00> : vector<16x32xf32>
    %135 = tpu.matmul %134, %1, %cst_37 {dimension_numbers = #tpu.dot_dimension_numbers<[1], [0], [0], [1], [0, 0, 1, 1], [], []>} : vector<16x64xf32>, vector<64x32xf32>, vector<16x32xf32> -> vector<16x32xf32>
    %136 = arith.addf %135, %7 : vector<16x32xf32>
    %137 = vector.broadcast %129 : f32 to vector<16x32xf32>
    %138 = arith.mulf %137, %136 : vector<16x32xf32>
    %139 = arith.addf %128, %138 : vector<16x32xf32>
    %cst_38 = arith.constant dense<0.000000e+00> : vector<16x64xf32>
    %140 = tpu.matmul %139, %0, %cst_38 {dimension_numbers = #tpu.dot_dimension_numbers<[1], [0], [0], [1], [0, 0, 1, 1], [], []>} : vector<16x32xf32>, vector<32x64xf32>, vector<16x64xf32> -> vector<16x64xf32>
    %141 = arith.addf %140, %4 : vector<16x64xf32>
    %142 = math.tanh %141 : vector<16x64xf32>
    %cst_39 = arith.constant dense<0.000000e+00> : vector<16x32xf32>
    %143 = tpu.matmul %142, %1, %cst_39 {dimension_numbers = #tpu.dot_dimension_numbers<[1], [0], [0], [1], [0, 0, 1, 1], [], []>} : vector<16x64xf32>, vector<64x32xf32>, vector<16x32xf32> -> vector<16x32xf32>
    %144 = arith.addf %143, %7 : vector<16x32xf32>
    %145 = vector.broadcast %129 : f32 to vector<16x32xf32>
    %146 = arith.mulf %145, %144 : vector<16x32xf32>
    %147 = arith.addf %128, %146 : vector<16x32xf32>
    %cst_40 = arith.constant dense<0.000000e+00> : vector<16x64xf32>
    %148 = tpu.matmul %147, %0, %cst_40 {dimension_numbers = #tpu.dot_dimension_numbers<[1], [0], [0], [1], [0, 0, 1, 1], [], []>} : vector<16x32xf32>, vector<32x64xf32>, vector<16x64xf32> -> vector<16x64xf32>
    %149 = arith.addf %148, %4 : vector<16x64xf32>
    %150 = math.tanh %149 : vector<16x64xf32>
    %cst_41 = arith.constant dense<0.000000e+00> : vector<16x32xf32>
    %151 = tpu.matmul %150, %1, %cst_41 {dimension_numbers = #tpu.dot_dimension_numbers<[1], [0], [0], [1], [0, 0, 1, 1], [], []>} : vector<16x64xf32>, vector<64x32xf32>, vector<16x32xf32> -> vector<16x32xf32>
    %152 = arith.addf %151, %7 : vector<16x32xf32>
    %153 = vector.broadcast %130 : f32 to vector<16x32xf32>
    %154 = arith.mulf %153, %152 : vector<16x32xf32>
    %155 = arith.addf %128, %154 : vector<16x32xf32>
    %cst_42 = arith.constant dense<0.000000e+00> : vector<16x64xf32>
    %156 = tpu.matmul %155, %0, %cst_42 {dimension_numbers = #tpu.dot_dimension_numbers<[1], [0], [0], [1], [0, 0, 1, 1], [], []>} : vector<16x32xf32>, vector<32x64xf32>, vector<16x64xf32> -> vector<16x64xf32>
    %157 = arith.addf %156, %4 : vector<16x64xf32>
    %158 = math.tanh %157 : vector<16x64xf32>
    %cst_43 = arith.constant dense<0.000000e+00> : vector<16x32xf32>
    %159 = tpu.matmul %158, %1, %cst_43 {dimension_numbers = #tpu.dot_dimension_numbers<[1], [0], [0], [1], [0, 0, 1, 1], [], []>} : vector<16x64xf32>, vector<64x32xf32>, vector<16x32xf32> -> vector<16x32xf32>
    %160 = arith.addf %159, %7 : vector<16x32xf32>
    %161 = arith.addf %144, %152 : vector<16x32xf32>
    %cst_44 = arith.constant 2.000000e+00 : f32
    %162 = vector.broadcast %cst_44 : f32 to vector<16x32xf32>
    %163 = arith.mulf %162, %161 : vector<16x32xf32>
    %164 = arith.addf %136, %163 : vector<16x32xf32>
    %165 = arith.addf %164, %160 : vector<16x32xf32>
    %166 = vector.broadcast %131 : f32 to vector<16x32xf32>
    %167 = arith.mulf %166, %165 : vector<16x32xf32>
    %168 = arith.addf %128, %167 : vector<16x32xf32>
    %169 = tpu.concatenate %48, %88, %128, %168 in 1 : vector<16x32xf32>, vector<16x32xf32>, vector<16x32xf32>, vector<16x32xf32> -> vector<16x128xf32>
    %c0_45 = arith.constant 0 : index
    %c0_46 = arith.constant 0 : index
    %170 = vector.load %arg7[%c0_45, %c0_46] : memref<16x256xf32, #tpu.memory_space<vmem>>, vector<16x128xf32>
    tpu.vector_store %arg7[%c0_45, %c0_46], %169 {strides = array<i32>} : memref<16x256xf32, #tpu.memory_space<vmem>>, vector<16x128xf32>,
    %c12 = arith.constant 12 : index
    %171 = memref.load %arg1[%c12] : memref<24xf32, #tpu.memory_space<smem>>
    %c13 = arith.constant 13 : index
    %172 = memref.load %arg1[%c13] : memref<24xf32, #tpu.memory_space<smem>>
    %c14 = arith.constant 14 : index
    %173 = memref.load %arg1[%c14] : memref<24xf32, #tpu.memory_space<smem>>
    %cst_47 = arith.constant dense<0.000000e+00> : vector<16x64xf32>
    %174 = tpu.matmul %168, %0, %cst_47 {dimension_numbers = #tpu.dot_dimension_numbers<[1], [0], [0], [1], [0, 0, 1, 1], [], []>} : vector<16x32xf32>, vector<32x64xf32>, vector<16x64xf32> -> vector<16x64xf32>
    %175 = arith.addf %174, %4 : vector<16x64xf32>
    %176 = math.tanh %175 : vector<16x64xf32>
    %cst_48 = arith.constant dense<0.000000e+00> : vector<16x32xf32>
    %177 = tpu.matmul %176, %1, %cst_48 {dimension_numbers = #tpu.dot_dimension_numbers<[1], [0], [0], [1], [0, 0, 1, 1], [], []>} : vector<16x64xf32>, vector<64x32xf32>, vector<16x32xf32> -> vector<16x32xf32>
    %178 = arith.addf %177, %7 : vector<16x32xf32>
    %179 = vector.broadcast %171 : f32 to vector<16x32xf32>
    %180 = arith.mulf %179, %178 : vector<16x32xf32>
    %181 = arith.addf %168, %180 : vector<16x32xf32>
    %cst_49 = arith.constant dense<0.000000e+00> : vector<16x64xf32>
    %182 = tpu.matmul %181, %0, %cst_49 {dimension_numbers = #tpu.dot_dimension_numbers<[1], [0], [0], [1], [0, 0, 1, 1], [], []>} : vector<16x32xf32>, vector<32x64xf32>, vector<16x64xf32> -> vector<16x64xf32>
    %183 = arith.addf %182, %4 : vector<16x64xf32>
    %184 = math.tanh %183 : vector<16x64xf32>
    %cst_50 = arith.constant dense<0.000000e+00> : vector<16x32xf32>
    %185 = tpu.matmul %184, %1, %cst_50 {dimension_numbers = #tpu.dot_dimension_numbers<[1], [0], [0], [1], [0, 0, 1, 1], [], []>} : vector<16x64xf32>, vector<64x32xf32>, vector<16x32xf32> -> vector<16x32xf32>
    %186 = arith.addf %185, %7 : vector<16x32xf32>
    %187 = vector.broadcast %171 : f32 to vector<16x32xf32>
    %188 = arith.mulf %187, %186 : vector<16x32xf32>
    %189 = arith.addf %168, %188 : vector<16x32xf32>
    %cst_51 = arith.constant dense<0.000000e+00> : vector<16x64xf32>
    %190 = tpu.matmul %189, %0, %cst_51 {dimension_numbers = #tpu.dot_dimension_numbers<[1], [0], [0], [1], [0, 0, 1, 1], [], []>} : vector<16x32xf32>, vector<32x64xf32>, vector<16x64xf32> -> vector<16x64xf32>
    %191 = arith.addf %190, %4 : vector<16x64xf32>
    %192 = math.tanh %191 : vector<16x64xf32>
    %cst_52 = arith.constant dense<0.000000e+00> : vector<16x32xf32>
    %193 = tpu.matmul %192, %1, %cst_52 {dimension_numbers = #tpu.dot_dimension_numbers<[1], [0], [0], [1], [0, 0, 1, 1], [], []>} : vector<16x64xf32>, vector<64x32xf32>, vector<16x32xf32> -> vector<16x32xf32>
    %194 = arith.addf %193, %7 : vector<16x32xf32>
    %195 = vector.broadcast %172 : f32 to vector<16x32xf32>
    %196 = arith.mulf %195, %194 : vector<16x32xf32>
    %197 = arith.addf %168, %196 : vector<16x32xf32>
    %cst_53 = arith.constant dense<0.000000e+00> : vector<16x64xf32>
    %198 = tpu.matmul %197, %0, %cst_53 {dimension_numbers = #tpu.dot_dimension_numbers<[1], [0], [0], [1], [0, 0, 1, 1], [], []>} : vector<16x32xf32>, vector<32x64xf32>, vector<16x64xf32> -> vector<16x64xf32>
    %199 = arith.addf %198, %4 : vector<16x64xf32>
    %200 = math.tanh %199 : vector<16x64xf32>
    %cst_54 = arith.constant dense<0.000000e+00> : vector<16x32xf32>
    %201 = tpu.matmul %200, %1, %cst_54 {dimension_numbers = #tpu.dot_dimension_numbers<[1], [0], [0], [1], [0, 0, 1, 1], [], []>} : vector<16x64xf32>, vector<64x32xf32>, vector<16x32xf32> -> vector<16x32xf32>
    %202 = arith.addf %201, %7 : vector<16x32xf32>
    %203 = arith.addf %186, %194 : vector<16x32xf32>
    %cst_55 = arith.constant 2.000000e+00 : f32
    %204 = vector.broadcast %cst_55 : f32 to vector<16x32xf32>
    %205 = arith.mulf %204, %203 : vector<16x32xf32>
    %206 = arith.addf %178, %205 : vector<16x32xf32>
    %207 = arith.addf %206, %202 : vector<16x32xf32>
    %208 = vector.broadcast %173 : f32 to vector<16x32xf32>
    %209 = arith.mulf %208, %207 : vector<16x32xf32>
    %210 = arith.addf %168, %209 : vector<16x32xf32>
    %c15 = arith.constant 15 : index
    %211 = memref.load %arg1[%c15] : memref<24xf32, #tpu.memory_space<smem>>
    %c16 = arith.constant 16 : index
    %212 = memref.load %arg1[%c16] : memref<24xf32, #tpu.memory_space<smem>>
    %c17 = arith.constant 17 : index
    %213 = memref.load %arg1[%c17] : memref<24xf32, #tpu.memory_space<smem>>
    %cst_56 = arith.constant dense<0.000000e+00> : vector<16x64xf32>
    %214 = tpu.matmul %210, %0, %cst_56 {dimension_numbers = #tpu.dot_dimension_numbers<[1], [0], [0], [1], [0, 0, 1, 1], [], []>} : vector<16x32xf32>, vector<32x64xf32>, vector<16x64xf32> -> vector<16x64xf32>
    %215 = arith.addf %214, %4 : vector<16x64xf32>
    %216 = math.tanh %215 : vector<16x64xf32>
    %cst_57 = arith.constant dense<0.000000e+00> : vector<16x32xf32>
    %217 = tpu.matmul %216, %1, %cst_57 {dimension_numbers = #tpu.dot_dimension_numbers<[1], [0], [0], [1], [0, 0, 1, 1], [], []>} : vector<16x64xf32>, vector<64x32xf32>, vector<16x32xf32> -> vector<16x32xf32>
    %218 = arith.addf %217, %7 : vector<16x32xf32>
    %219 = vector.broadcast %211 : f32 to vector<16x32xf32>
    %220 = arith.mulf %219, %218 : vector<16x32xf32>
    %221 = arith.addf %210, %220 : vector<16x32xf32>
    %cst_58 = arith.constant dense<0.000000e+00> : vector<16x64xf32>
    %222 = tpu.matmul %221, %0, %cst_58 {dimension_numbers = #tpu.dot_dimension_numbers<[1], [0], [0], [1], [0, 0, 1, 1], [], []>} : vector<16x32xf32>, vector<32x64xf32>, vector<16x64xf32> -> vector<16x64xf32>
    %223 = arith.addf %222, %4 : vector<16x64xf32>
    %224 = math.tanh %223 : vector<16x64xf32>
    %cst_59 = arith.constant dense<0.000000e+00> : vector<16x32xf32>
    %225 = tpu.matmul %224, %1, %cst_59 {dimension_numbers = #tpu.dot_dimension_numbers<[1], [0], [0], [1], [0, 0, 1, 1], [], []>} : vector<16x64xf32>, vector<64x32xf32>, vector<16x32xf32> -> vector<16x32xf32>
    %226 = arith.addf %225, %7 : vector<16x32xf32>
    %227 = vector.broadcast %211 : f32 to vector<16x32xf32>
    %228 = arith.mulf %227, %226 : vector<16x32xf32>
    %229 = arith.addf %210, %228 : vector<16x32xf32>
    %cst_60 = arith.constant dense<0.000000e+00> : vector<16x64xf32>
    %230 = tpu.matmul %229, %0, %cst_60 {dimension_numbers = #tpu.dot_dimension_numbers<[1], [0], [0], [1], [0, 0, 1, 1], [], []>} : vector<16x32xf32>, vector<32x64xf32>, vector<16x64xf32> -> vector<16x64xf32>
    %231 = arith.addf %230, %4 : vector<16x64xf32>
    %232 = math.tanh %231 : vector<16x64xf32>
    %cst_61 = arith.constant dense<0.000000e+00> : vector<16x32xf32>
    %233 = tpu.matmul %232, %1, %cst_61 {dimension_numbers = #tpu.dot_dimension_numbers<[1], [0], [0], [1], [0, 0, 1, 1], [], []>} : vector<16x64xf32>, vector<64x32xf32>, vector<16x32xf32> -> vector<16x32xf32>
    %234 = arith.addf %233, %7 : vector<16x32xf32>
    %235 = vector.broadcast %212 : f32 to vector<16x32xf32>
    %236 = arith.mulf %235, %234 : vector<16x32xf32>
    %237 = arith.addf %210, %236 : vector<16x32xf32>
    %cst_62 = arith.constant dense<0.000000e+00> : vector<16x64xf32>
    %238 = tpu.matmul %237, %0, %cst_62 {dimension_numbers = #tpu.dot_dimension_numbers<[1], [0], [0], [1], [0, 0, 1, 1], [], []>} : vector<16x32xf32>, vector<32x64xf32>, vector<16x64xf32> -> vector<16x64xf32>
    %239 = arith.addf %238, %4 : vector<16x64xf32>
    %240 = math.tanh %239 : vector<16x64xf32>
    %cst_63 = arith.constant dense<0.000000e+00> : vector<16x32xf32>
    %241 = tpu.matmul %240, %1, %cst_63 {dimension_numbers = #tpu.dot_dimension_numbers<[1], [0], [0], [1], [0, 0, 1, 1], [], []>} : vector<16x64xf32>, vector<64x32xf32>, vector<16x32xf32> -> vector<16x32xf32>
    %242 = arith.addf %241, %7 : vector<16x32xf32>
    %243 = arith.addf %226, %234 : vector<16x32xf32>
    %cst_64 = arith.constant 2.000000e+00 : f32
    %244 = vector.broadcast %cst_64 : f32 to vector<16x32xf32>
    %245 = arith.mulf %244, %243 : vector<16x32xf32>
    %246 = arith.addf %218, %245 : vector<16x32xf32>
    %247 = arith.addf %246, %242 : vector<16x32xf32>
    %248 = vector.broadcast %213 : f32 to vector<16x32xf32>
    %249 = arith.mulf %248, %247 : vector<16x32xf32>
    %250 = arith.addf %210, %249 : vector<16x32xf32>
    %c18 = arith.constant 18 : index
    %251 = memref.load %arg1[%c18] : memref<24xf32, #tpu.memory_space<smem>>
    %c19 = arith.constant 19 : index
    %252 = memref.load %arg1[%c19] : memref<24xf32, #tpu.memory_space<smem>>
    %c20 = arith.constant 20 : index
    %253 = memref.load %arg1[%c20] : memref<24xf32, #tpu.memory_space<smem>>
    %cst_65 = arith.constant dense<0.000000e+00> : vector<16x64xf32>
    %254 = tpu.matmul %250, %0, %cst_65 {dimension_numbers = #tpu.dot_dimension_numbers<[1], [0], [0], [1], [0, 0, 1, 1], [], []>} : vector<16x32xf32>, vector<32x64xf32>, vector<16x64xf32> -> vector<16x64xf32>
    %255 = arith.addf %254, %4 : vector<16x64xf32>
    %256 = math.tanh %255 : vector<16x64xf32>
    %cst_66 = arith.constant dense<0.000000e+00> : vector<16x32xf32>
    %257 = tpu.matmul %256, %1, %cst_66 {dimension_numbers = #tpu.dot_dimension_numbers<[1], [0], [0], [1], [0, 0, 1, 1], [], []>} : vector<16x64xf32>, vector<64x32xf32>, vector<16x32xf32> -> vector<16x32xf32>
    %258 = arith.addf %257, %7 : vector<16x32xf32>
    %259 = vector.broadcast %251 : f32 to vector<16x32xf32>
    %260 = arith.mulf %259, %258 : vector<16x32xf32>
    %261 = arith.addf %250, %260 : vector<16x32xf32>
    %cst_67 = arith.constant dense<0.000000e+00> : vector<16x64xf32>
    %262 = tpu.matmul %261, %0, %cst_67 {dimension_numbers = #tpu.dot_dimension_numbers<[1], [0], [0], [1], [0, 0, 1, 1], [], []>} : vector<16x32xf32>, vector<32x64xf32>, vector<16x64xf32> -> vector<16x64xf32>
    %263 = arith.addf %262, %4 : vector<16x64xf32>
    %264 = math.tanh %263 : vector<16x64xf32>
    %cst_68 = arith.constant dense<0.000000e+00> : vector<16x32xf32>
    %265 = tpu.matmul %264, %1, %cst_68 {dimension_numbers = #tpu.dot_dimension_numbers<[1], [0], [0], [1], [0, 0, 1, 1], [], []>} : vector<16x64xf32>, vector<64x32xf32>, vector<16x32xf32> -> vector<16x32xf32>
    %266 = arith.addf %265, %7 : vector<16x32xf32>
    %267 = vector.broadcast %251 : f32 to vector<16x32xf32>
    %268 = arith.mulf %267, %266 : vector<16x32xf32>
    %269 = arith.addf %250, %268 : vector<16x32xf32>
    %cst_69 = arith.constant dense<0.000000e+00> : vector<16x64xf32>
    %270 = tpu.matmul %269, %0, %cst_69 {dimension_numbers = #tpu.dot_dimension_numbers<[1], [0], [0], [1], [0, 0, 1, 1], [], []>} : vector<16x32xf32>, vector<32x64xf32>, vector<16x64xf32> -> vector<16x64xf32>
    %271 = arith.addf %270, %4 : vector<16x64xf32>
    %272 = math.tanh %271 : vector<16x64xf32>
    %cst_70 = arith.constant dense<0.000000e+00> : vector<16x32xf32>
    %273 = tpu.matmul %272, %1, %cst_70 {dimension_numbers = #tpu.dot_dimension_numbers<[1], [0], [0], [1], [0, 0, 1, 1], [], []>} : vector<16x64xf32>, vector<64x32xf32>, vector<16x32xf32> -> vector<16x32xf32>
    %274 = arith.addf %273, %7 : vector<16x32xf32>
    %275 = vector.broadcast %252 : f32 to vector<16x32xf32>
    %276 = arith.mulf %275, %274 : vector<16x32xf32>
    %277 = arith.addf %250, %276 : vector<16x32xf32>
    %cst_71 = arith.constant dense<0.000000e+00> : vector<16x64xf32>
    %278 = tpu.matmul %277, %0, %cst_71 {dimension_numbers = #tpu.dot_dimension_numbers<[1], [0], [0], [1], [0, 0, 1, 1], [], []>} : vector<16x32xf32>, vector<32x64xf32>, vector<16x64xf32> -> vector<16x64xf32>
    %279 = arith.addf %278, %4 : vector<16x64xf32>
    %280 = math.tanh %279 : vector<16x64xf32>
    %cst_72 = arith.constant dense<0.000000e+00> : vector<16x32xf32>
    %281 = tpu.matmul %280, %1, %cst_72 {dimension_numbers = #tpu.dot_dimension_numbers<[1], [0], [0], [1], [0, 0, 1, 1], [], []>} : vector<16x64xf32>, vector<64x32xf32>, vector<16x32xf32> -> vector<16x32xf32>
    %282 = arith.addf %281, %7 : vector<16x32xf32>
    %283 = arith.addf %266, %274 : vector<16x32xf32>
    %cst_73 = arith.constant 2.000000e+00 : f32
    %284 = vector.broadcast %cst_73 : f32 to vector<16x32xf32>
    %285 = arith.mulf %284, %283 : vector<16x32xf32>
    %286 = arith.addf %258, %285 : vector<16x32xf32>
    %287 = arith.addf %286, %282 : vector<16x32xf32>
    %288 = vector.broadcast %253 : f32 to vector<16x32xf32>
    %289 = arith.mulf %288, %287 : vector<16x32xf32>
    %290 = arith.addf %250, %289 : vector<16x32xf32>
    %c21 = arith.constant 21 : index
    %291 = memref.load %arg1[%c21] : memref<24xf32, #tpu.memory_space<smem>>
    %c22 = arith.constant 22 : index
    %292 = memref.load %arg1[%c22] : memref<24xf32, #tpu.memory_space<smem>>
    %c23 = arith.constant 23 : index
    %293 = memref.load %arg1[%c23] : memref<24xf32, #tpu.memory_space<smem>>
    %cst_74 = arith.constant dense<0.000000e+00> : vector<16x64xf32>
    %294 = tpu.matmul %290, %0, %cst_74 {dimension_numbers = #tpu.dot_dimension_numbers<[1], [0], [0], [1], [0, 0, 1, 1], [], []>} : vector<16x32xf32>, vector<32x64xf32>, vector<16x64xf32> -> vector<16x64xf32>
    %295 = arith.addf %294, %4 : vector<16x64xf32>
    %296 = math.tanh %295 : vector<16x64xf32>
    %cst_75 = arith.constant dense<0.000000e+00> : vector<16x32xf32>
    %297 = tpu.matmul %296, %1, %cst_75 {dimension_numbers = #tpu.dot_dimension_numbers<[1], [0], [0], [1], [0, 0, 1, 1], [], []>} : vector<16x64xf32>, vector<64x32xf32>, vector<16x32xf32> -> vector<16x32xf32>
    %298 = arith.addf %297, %7 : vector<16x32xf32>
    %299 = vector.broadcast %291 : f32 to vector<16x32xf32>
    %300 = arith.mulf %299, %298 : vector<16x32xf32>
    %301 = arith.addf %290, %300 : vector<16x32xf32>
    %cst_76 = arith.constant dense<0.000000e+00> : vector<16x64xf32>
    %302 = tpu.matmul %301, %0, %cst_76 {dimension_numbers = #tpu.dot_dimension_numbers<[1], [0], [0], [1], [0, 0, 1, 1], [], []>} : vector<16x32xf32>, vector<32x64xf32>, vector<16x64xf32> -> vector<16x64xf32>
    %303 = arith.addf %302, %4 : vector<16x64xf32>
    %304 = math.tanh %303 : vector<16x64xf32>
    %cst_77 = arith.constant dense<0.000000e+00> : vector<16x32xf32>
    %305 = tpu.matmul %304, %1, %cst_77 {dimension_numbers = #tpu.dot_dimension_numbers<[1], [0], [0], [1], [0, 0, 1, 1], [], []>} : vector<16x64xf32>, vector<64x32xf32>, vector<16x32xf32> -> vector<16x32xf32>
    %306 = arith.addf %305, %7 : vector<16x32xf32>
    %307 = vector.broadcast %291 : f32 to vector<16x32xf32>
    %308 = arith.mulf %307, %306 : vector<16x32xf32>
    %309 = arith.addf %290, %308 : vector<16x32xf32>
    %cst_78 = arith.constant dense<0.000000e+00> : vector<16x64xf32>
    %310 = tpu.matmul %309, %0, %cst_78 {dimension_numbers = #tpu.dot_dimension_numbers<[1], [0], [0], [1], [0, 0, 1, 1], [], []>} : vector<16x32xf32>, vector<32x64xf32>, vector<16x64xf32> -> vector<16x64xf32>
    %311 = arith.addf %310, %4 : vector<16x64xf32>
    %312 = math.tanh %311 : vector<16x64xf32>
    %cst_79 = arith.constant dense<0.000000e+00> : vector<16x32xf32>
    %313 = tpu.matmul %312, %1, %cst_79 {dimension_numbers = #tpu.dot_dimension_numbers<[1], [0], [0], [1], [0, 0, 1, 1], [], []>} : vector<16x64xf32>, vector<64x32xf32>, vector<16x32xf32> -> vector<16x32xf32>
    %314 = arith.addf %313, %7 : vector<16x32xf32>
    %315 = vector.broadcast %292 : f32 to vector<16x32xf32>
    %316 = arith.mulf %315, %314 : vector<16x32xf32>
    %317 = arith.addf %290, %316 : vector<16x32xf32>
    %cst_80 = arith.constant dense<0.000000e+00> : vector<16x64xf32>
    %318 = tpu.matmul %317, %0, %cst_80 {dimension_numbers = #tpu.dot_dimension_numbers<[1], [0], [0], [1], [0, 0, 1, 1], [], []>} : vector<16x32xf32>, vector<32x64xf32>, vector<16x64xf32> -> vector<16x64xf32>
    %319 = arith.addf %318, %4 : vector<16x64xf32>
    %320 = math.tanh %319 : vector<16x64xf32>
    %cst_81 = arith.constant dense<0.000000e+00> : vector<16x32xf32>
    %321 = tpu.matmul %320, %1, %cst_81 {dimension_numbers = #tpu.dot_dimension_numbers<[1], [0], [0], [1], [0, 0, 1, 1], [], []>} : vector<16x64xf32>, vector<64x32xf32>, vector<16x32xf32> -> vector<16x32xf32>
    %322 = arith.addf %321, %7 : vector<16x32xf32>
    %323 = arith.addf %306, %314 : vector<16x32xf32>
    %cst_82 = arith.constant 2.000000e+00 : f32
    %324 = vector.broadcast %cst_82 : f32 to vector<16x32xf32>
    %325 = arith.mulf %324, %323 : vector<16x32xf32>
    %326 = arith.addf %298, %325 : vector<16x32xf32>
    %327 = arith.addf %326, %322 : vector<16x32xf32>
    %328 = vector.broadcast %293 : f32 to vector<16x32xf32>
    %329 = arith.mulf %328, %327 : vector<16x32xf32>
    %330 = arith.addf %290, %329 : vector<16x32xf32>
    %331 = tpu.concatenate %210, %250, %290, %330 in 1 : vector<16x32xf32>, vector<16x32xf32>, vector<16x32xf32>, vector<16x32xf32> -> vector<16x128xf32>
    %c0_83 = arith.constant 0 : index
    %c128 = arith.constant 128 : index
    %332 = vector.load %arg7[%c0_83, %c128] : memref<16x256xf32, #tpu.memory_space<vmem>>, vector<16x128xf32>
    tpu.vector_store %arg7[%c0_83, %c128], %331 {strides = array<i32>} : memref<16x256xf32, #tpu.memory_space<vmem>>, vector<16x128xf32>,
    return
  }
  func.func @transform_0(%arg0: i32) -> i32 {
    %c0_i32 = arith.constant 0 : i32
    %c0_i32_0 = arith.constant 0 : i32
    return %c0_i32 : i32
  }
  func.func @transform_1(%arg0: i32) -> (i32, i32) {
    %c0_i32 = arith.constant 0 : i32
    %c0_i32_0 = arith.constant 0 : i32
    return %arg0, %c0_i32 : i32, i32
  }
  func.func @transform_2(%arg0: i32) -> (i32, i32) {
    %c0_i32 = arith.constant 0 : i32
    %c0_i32_0 = arith.constant 0 : i32
    %c0_i32_1 = arith.constant 0 : i32
    return %c0_i32, %c0_i32_0 : i32, i32
  }
  func.func @transform_3(%arg0: i32) -> (i32, i32) {
    %c0_i32 = arith.constant 0 : i32
    %c0_i32_0 = arith.constant 0 : i32
    %c0_i32_1 = arith.constant 0 : i32
    return %c0_i32, %c0_i32_0 : i32, i32
  }
  func.func @transform_4(%arg0: i32) -> (i32, i32) {
    %c0_i32 = arith.constant 0 : i32
    %c0_i32_0 = arith.constant 0 : i32
    %c0_i32_1 = arith.constant 0 : i32
    return %c0_i32, %c0_i32_0 : i32, i32
  }
  func.func @transform_5(%arg0: i32) -> (i32, i32) {
    %c0_i32 = arith.constant 0 : i32
    %c0_i32_0 = arith.constant 0 : i32
    %c0_i32_1 = arith.constant 0 : i32
    return %c0_i32, %c0_i32_0 : i32, i32
  }
  func.func @transform_6(%arg0: i32) -> (i32, i32) {
    %c0_i32 = arith.constant 0 : i32
    %c0_i32_0 = arith.constant 0 : i32
    return %arg0, %c0_i32 : i32, i32
  }
}

</mosaic_0001>

<bundles_post_ra>
// kernel: tpu_custom_call.1
= control target key start
LH: loop header
LB: loop body
LE: loop exit
PB: predicated region body
PF: predicated region fallthrough
CT: control target
= control target key end

     0   :  { %11 = vsyncpa [#allocation4], 0  ;;  %s9248_s0 = inlined_call_operand.vmem [shape: f32[24], index: 0, kind: input, shape index: {}]   ;;  %s9249_s1 = inlined_call_operand.vmem [shape: f32[16,32], index: 1, kind: input, shape index: {}]   ;;  %s9250_s2 = inlined_call_operand.vmem [shape: f32[32,64], index: 2, kind: input, shape index: {}]   ;;  %s9251_s3 = inlined_call_operand.vmem [shape: f32[1,64], index: 3, kind: input, shape index: {}]   ;;  %s9252_s4 = inlined_call_operand.vmem [shape: f32[64,32], index: 4, kind: input, shape index: {}]   ;;  %s9253_s5 = inlined_call_operand.vmem [shape: f32[1,32], index: 5, kind: input, shape index: {}]   ;;  %s9254_s6 = inlined_call_operand.hbm [shape: f32[16,256], index: 6, kind: output, shape index: {}]  }
   0x1   :  { %12 = vsyncpa [#allocation3], 0  ;;  %s19_s23 = sshll.u32 %s9248_s0, 4  ;;  %s20_s23 = int_to_ptr.vmem [resolvable:$true] %s19_s23 }
   0x2   :  { %s8159_s24 = scalar_lea.vmem %s20_s23, 16  ;;  %p8164_p1 = scmp.lt.s32.totalorder %s20_s23, %s20_s23 }
   0x3   :  { %p8160_p0 = scmp.ne.s32.totalorder %s20_s23, %s8159_s24  ;;  %p8165_p2 = scmp.lt.s32.totalorder %s8159_s24, %s8159_s24 }
   0x5   :  { %p8166_p3 = por %p8165_p2, %p8164_p1 }
   0x7   :  { %p8167_p4 = pnand %p8166_p3, %p8160_p0 }
   0x9   :  { %8170 = shalt.err (!%p8167_p4)
}
   0xa   :  { %s8197_s25 = smov [#allocation2]  }
   0xb   :  { %22 = dma.vmem_to_smem %s20_s23, 16, %s8197_s25, [#allocation4]  }
   0xc   :  { %8193 = dma.done.wait [#allocation4], 16  }
   0xd   :  { %8194 = vsyncadd [#allocation4], 4294967280 }
   0xe   :  { %36 = sfence }
   0xf   :  { %v37_v0 = vld [vmem:[%s9250_s2] sm:$0xff]  ;;  %v38_v1 = vld [vmem:[%s9250_s2 + $0x8] sm:$0xff]  ;;  %v39_v2 = vld [vmem:[%s9250_s2 + $0x10] sm:$0xff]  ;;  %vm68_vm0 = vcmask 261120   ;;  %vm152_vm1 = vcmask 523264   ;;  %s5629_s30 = sld [smem:[#allocation2 + $0x1]] }
  0x10   :  { %v8251_v3 = vpack.c.bf16 %v38_v1, %v37_v0  ;;  %v40_v4 = vld [vmem:[%s9250_s2 + $0x18] sm:$0xff]  ;;  %v8259_v5 = vld [vmem:[%s9249_s1] sm:$0xff]  ;;  %v8275_v7 = vld [vmem:[%s9249_s1 + $0x8] sm:$0xff]  ;;  %s5630_s7 = sld [smem:[#allocation2 + $0x2]]  ;;  %s5647_s8 = sld [smem:[#allocation2 + $0x3]]  ;;  %vm2835_vm2 = vcmask 785408  }
  0x11   :  { %v8261_v6 = vpack.c.bf16 %v40_v4, %v39_v2  ;;  %6300 = vmatprep.mubr.msk.f32.mxu1 %vm68_vm0, %v8259_v5  ;;  %v41_v8 = vld [vmem:[%s9252_s4] sm:$0xff]  ;;  %v42_v9 = vld [vmem:[%s9252_s4 + $0x8] sm:$0xff]  ;;  %v43_v11 = vld [vmem:[%s9252_s4 + $0x10] sm:$0xff]  ;;  %s5648_s9 = sld [smem:[#allocation2 + $0x4]]  ;;  %s5649_s10 = sld [smem:[#allocation2 + $0x5]] }
  0x12   :  { %7253 = vmatprep.subr.bf16.mxu1 %v8251_v3  ;;  %7277 = vmatprep.subr.bf16.mxu0 %v8251_v3  ;;  %v8286_v10 = vpack.c.bf16 %v42_v9, %v41_v8  ;;  %v44_v12 = vld [vmem:[%s9252_s4 + $0x18] sm:$0xff]  ;;  %v45_v14 = vld [vmem:[%s9252_s4 + $0x20] sm:$0xff]  ;;  %v46_v15 = vld [vmem:[%s9252_s4 + $0x28] sm:$0xff]  ;;  %s8198_s2 = smov 32   ;;  %s5666_s11 = sld [smem:[#allocation2 + $0x6]] }
  0x13   :  { %7255 = vmatpush3.bf16.msra.mxu1 %v8251_v3  ;;  %7279 = vmatpush3.bf16.msra.mxu0 %v8251_v3  ;;  %v8297_v13 = vpack.c.bf16 %v44_v12, %v43_v11  ;;  %v47_v16 = vld [vmem:[%s9252_s4 + $0x30] sm:$0xff]  ;;  %v8310_v17 = vpack.c.bf16 %v46_v15, %v45_v14  ;;  %v48_v18 = vld [vmem:[%s9252_s4 + $0x38] sm:$0xff]  ;;  %v8325_v20 = vld [vmem:[%s9251_s3] ss:$0 sm:$0xff]  ;;  %s65_s4 = sld [smem:[#allocation2]]  ;;  %s5667_s12 = sld [smem:[#allocation2 + $0x7]] }
  0x14   :  { %7257 = vmatprep.subr.bf16.mxu1 %v8261_v6  ;;  %7281 = vmatprep.subr.bf16.mxu0 %v8261_v6  ;;  %v8315_v19 = vpack.c.bf16 %v48_v18, %v47_v16  ;;  %v8338_v27 = vld [vmem:[%s9253_s5] ss:$0 sm:$0xff]  ;;  %s5668_s13 = sld [smem:[#allocation2 + $0x8]]  ;;  %s8199_s14 = smov 64  }
  0x15   :  { %v571_v58 = vstv %s5629_s30  ;;  %s5685_s15 = sld [smem:[#allocation2 + $0x9]]  ;;  %s5686_s1 = sld [smem:[#allocation2 + $0xa]] }
  0x16   :  { %s5687_s18 = sld [smem:[#allocation2 + $0xb]]  ;;  %s8200_s21 = smov 96  }
  0x17   :  { %7259 = vmatpush3.bf16.msra.mxu1 %v8261_v6  ;;  %7283 = vmatpush3.bf16.msra.mxu0 %v8261_v6  ;;  %s5704_s22 = sld [smem:[#allocation2 + $0xc]]  ;;  %s5705_s23 = sld [smem:[#allocation2 + $0xd]] }
  0x18   :  { %7261 = vmatprep.subr.bf16.mxu1 %v8286_v10  ;;  %7285 = vmatprep.subr.bf16.mxu0 %v8286_v10  ;;  %s5706_s24 = sld [smem:[#allocation2 + $0xe]]  ;;  %s5723_s25 = sld [smem:[#allocation2 + $0xf]] }
  0x19   :  { %v234_v29 = vstv %s65_s4  ;;  %s5724_s26 = sld [smem:[#allocation2 + $0x10]]  ;;  %s5725_s27 = sld [smem:[#allocation2 + $0x11]] }
  0x1a   :  { %6301 = vmatmul.mubr.msk.f32.vlgmr.msra.gmra.mrb[0].mxu1 %vm68_vm0, %v8275_v7  ;;  %s5742_s28 = sld [smem:[#allocation2 + $0x12]]  ;;  %s5743_s4 = sld [smem:[#allocation2 + $0x13]] }
  0x1b   :  { %7263 = vmatpush3.bf16.msra.mxu1 %v8286_v10  ;;  %s5744_s29 = sld [smem:[#allocation2 + $0x14]]  ;;  %s5761_s0 = sld [smem:[#allocation2 + $0x15]] }
  0x1c   :  { %7265 = vmatprep.subr.bf16.mxu1 %v8297_v13 }
  0x1f   :  { %7267 = vmatpush3.bf16.msra.mxu1 %v8297_v13 }
  0x20   :  { %7269 = vmatprep.subr.bf16.mxu1 %v8310_v17 }
  0x23   :  { %7271 = vmatpush3.bf16.msra.mxu1 %v8310_v17 }
  0x24   :  { %7273 = vmatprep.subr.bf16.mxu1 %v8315_v19 }
  0x27   :  { %7275 = vmatpush3.bf16.msra.mxu1 %v8315_v19 }
  0x28   :  { %7301 = vmatprep.subr.bf16.mxu1 %v8251_v3 }
  0xed   :  { %v6302_v21 = vpop.f32.mrb[0].mxu1 }
  0xee   :  { %v147_v22 = vadd.f32 %v6302_v21, %v8325_v20  ;;  %v141_v23 = vpop.f32.mrb[1].mxu1 }
  0xef   :  { %v142_v24 = vadd.f32 %v8325_v20, %v141_v23 }
  0xf1   :  { %8027 = vtanh.f32 %v142_v24 }
  0xf2   :  { %8029 = vtanh.f32 %v147_v22 }
  0xfb   :  { %v8028_v25 = vpop.eup %8027 }
  0xfc   :  { %v8030_v26 = vpop.eup %8029  ;;  %6319 = vmatprep.mubr.msk.f32.mxu1 %vm152_vm1, %v8028_v25  ;;  %v748_v25 = vstv %s5630_s7 }
  0xfd   :  { %6320 = vmatmul.mubr.msk.f32.vlgmr.msra.gmra.mrb[2].mxu1 %vm152_vm1, %v8030_v26 }
  0xfe   :  { %7303 = vmatpush3.bf16.msra.mxu1 %v8251_v3 }
  0xff   :  { %7305 = vmatprep.subr.bf16.mxu1 %v8261_v6 }
 0x102   :  { %7307 = vmatpush3.bf16.msra.mxu1 %v8261_v6 }
 0x103   :  { %7309 = vmatprep.subr.bf16.mxu1 %v8286_v10 }
 0x1d0   :  { %v6321_v28 = vpop.f32.mrb[2].mxu1 }
 0x1d1   :  { %v8341_v30 = vadd.f32 %v6321_v28, %v8338_v27  ;;  %v225_v31 = vpop.f32.mrb[3].mxu1 }
 0x1d2   :  { %v8344_v32 = vadd.f32 %v8338_v27, %v225_v31 }
 0x1d3   :  { %v236_v33 = vmul.f32 %v234_v29, %v8341_v30 }
 0x1d4   :  { %v235_v34 = vmul.f32 %v234_v29, %v8344_v32 }
 0x1d5   :  { %v238_v36 = vadd.f32 %v236_v33, %v8275_v7 }
 0x1d6   :  { %v237_v35 = vadd.f32 %v235_v34, %v8259_v5 }
 0x1d8   :  { %6330 = vmatprep.mubr.msk.f32.mxu0 %vm68_vm0, %v237_v35 }
 0x1d9   :  { %6331 = vmatmul.mubr.msk.f32.vlgmr.msra.gmra.mrb[0].mxu0 %vm68_vm0, %v238_v36 }
 0x1da   :  { %7287 = vmatpush3.bf16.msra.mxu0 %v8286_v10 }
 0x1db   :  { %7289 = vmatprep.subr.bf16.mxu0 %v8297_v13 }
 0x1de   :  { %7291 = vmatpush3.bf16.msra.mxu0 %v8297_v13 }
 0x1df   :  { %7293 = vmatprep.subr.bf16.mxu0 %v8310_v17 }
 0x1e2   :  { %7295 = vmatpush3.bf16.msra.mxu0 %v8310_v17 }
 0x1e3   :  { %7297 = vmatprep.subr.bf16.mxu0 %v8315_v19 }
 0x1e6   :  { %7299 = vmatpush3.bf16.msra.mxu0 %v8315_v19 }
 0x1e7   :  { %7325 = vmatprep.subr.bf16.mxu0 %v8251_v3 }
 0x2ac   :  { %v6332_v37 = vpop.f32.mrb[0].mxu0 }
 0x2ad   :  { %v317_v38 = vadd.f32 %v6332_v37, %v8325_v20  ;;  %v311_v39 = vpop.f32.mrb[1].mxu0 }
 0x2ae   :  { %v312_v40 = vadd.f32 %v8325_v20, %v311_v39 }
 0x2b0   :  { %8031 = vtanh.f32 %v312_v40  ;;  %v920_v40 = vstv %s5647_s8 }
 0x2b1   :  { %8033 = vtanh.f32 %v317_v38 }
 0x2ba   :  { %v8032_v41 = vpop.eup %8031 }
 0x2bb   :  { %v8034_v42 = vpop.eup %8033  ;;  %6349 = vmatprep.mubr.msk.f32.mxu0 %vm152_vm1, %v8032_v41 }
 0x2bc   :  { %6350 = vmatmul.mubr.msk.f32.vlgmr.msra.gmra.mrb[2].mxu0 %vm152_vm1, %v8034_v42 }
 0x2bd   :  { %7327 = vmatpush3.bf16.msra.mxu0 %v8251_v3 }
 0x2be   :  { %7329 = vmatprep.subr.bf16.mxu0 %v8261_v6 }
 0x2c1   :  { %7331 = vmatpush3.bf16.msra.mxu0 %v8261_v6 }
 0x2c2   :  { %7333 = vmatprep.subr.bf16.mxu0 %v8286_v10 }
 0x38f   :  { %v6351_v43 = vpop.f32.mrb[2].mxu0 }
 0x390   :  { %v8369_v44 = vadd.f32 %v6351_v43, %v8338_v27  ;;  %v394_v45 = vpop.f32.mrb[3].mxu0 }
 0x391   :  { %v8372_v46 = vadd.f32 %v8338_v27, %v394_v45 }
 0x392   :  { %v404_v47 = vmul.f32 %v8369_v44, %v234_v29 }
 0x393   :  { %v403_v48 = vmul.f32 %v8372_v46, %v234_v29 }
 0x394   :  { %v406_v50 = vadd.f32 %v404_v47, %v8275_v7 }
 0x395   :  { %v405_v49 = vadd.f32 %v403_v48, %v8259_v5 }
 0x397   :  { %6360 = vmatprep.mubr.msk.f32.mxu1 %vm68_vm0, %v405_v49 }
 0x398   :  { %6361 = vmatmul.mubr.msk.f32.vlgmr.msra.gmra.mrb[4].mxu1 %vm68_vm0, %v406_v50 }
 0x399   :  { %7311 = vmatpush3.bf16.msra.mxu1 %v8286_v10 }
 0x39a   :  { %7313 = vmatprep.subr.bf16.mxu1 %v8297_v13 }
 0x39d   :  { %7315 = vmatpush3.bf16.msra.mxu1 %v8297_v13 }
 0x39e   :  { %7317 = vmatprep.subr.bf16.mxu1 %v8310_v17 }
 0x3a1   :  { %7319 = vmatpush3.bf16.msra.mxu1 %v8310_v17 }
 0x3a2   :  { %7321 = vmatprep.subr.bf16.mxu1 %v8315_v19 }
 0x3a5   :  { %7323 = vmatpush3.bf16.msra.mxu1 %v8315_v19 }
 0x3a6   :  { %7349 = vmatprep.subr.bf16.mxu1 %v8251_v3 }
 0x46b   :  { %v6362_v51 = vpop.f32.mrb[4].mxu1 }
 0x46c   :  { %v485_v52 = vadd.f32 %v6362_v51, %v8325_v20  ;;  %v479_v53 = vpop.f32.mrb[5].mxu1 }
 0x46d   :  { %v480_v54 = vadd.f32 %v8325_v20, %v479_v53 }
 0x46f   :  { %8035 = vtanh.f32 %v480_v54 }
 0x470   :  { %8037 = vtanh.f32 %v485_v52 }
 0x479   :  { %v8036_v55 = vpop.eup %8035 }
 0x47a   :  { %v8038_v56 = vpop.eup %8037  ;;  %6379 = vmatprep.mubr.msk.f32.mxu1 %vm152_vm1, %v8036_v55 }
 0x47b   :  { %6380 = vmatmul.mubr.msk.f32.vlgmr.msra.gmra.mrb[6].mxu1 %vm152_vm1, %v8038_v56 }
 0x47c   :  { %7351 = vmatpush3.bf16.msra.mxu1 %v8251_v3 }
 0x47d   :  { %7353 = vmatprep.subr.bf16.mxu1 %v8261_v6 }
 0x480   :  { %7355 = vmatpush3.bf16.msra.mxu1 %v8261_v6 }
 0x481   :  { %7357 = vmatprep.subr.bf16.mxu1 %v8286_v10 }
 0x54e   :  { %v6381_v57 = vpop.f32.mrb[6].mxu1 }
 0x54f   :  { %v568_v59 = vadd.f32 %v6381_v57, %v8338_v27  ;;  %v562_v60 = vpop.f32.mrb[7].mxu1 }
 0x550   :  { %v563_v61 = vadd.f32 %v8338_v27, %v562_v60 }
 0x551   :  { %v573_v62 = vmul.f32 %v571_v58, %v568_v59  ;;  %v741_v14 = vadd.f32 %v568_v59, %v8369_v44 }
 0x552   :  { %v572_v63 = vmul.f32 %v571_v58, %v563_v61  ;;  %v740_v15 = vadd.f32 %v563_v61, %v8372_v46 }
 0x553   :  { %v575_v1 = vadd.f32 %v573_v62, %v8275_v7  ;;  %v743_v16 = vmul.f32 2.0, %v741_v14 }
 0x554   :  { %v574_v0 = vadd.f32 %v572_v63, %v8259_v5  ;;  %v742_v18 = vmul.f32 2.0, %v740_v15 }
 0x555   :  { %v745_v23 = vadd.f32 %v743_v16, %v8341_v30 }
 0x556   :  { %6390 = vmatprep.mubr.msk.f32.mxu0 %vm68_vm0, %v574_v0  ;;  %v744_v28 = vadd.f32 %v742_v18, %v8344_v32 }
 0x557   :  { %6391 = vmatmul.mubr.msk.f32.vlgmr.msra.gmra.mrb[4].mxu0 %vm68_vm0, %v575_v1 }
 0x558   :  { %7335 = vmatpush3.bf16.msra.mxu0 %v8286_v10 }
 0x559   :  { %7337 = vmatprep.subr.bf16.mxu0 %v8297_v13 }
 0x55c   :  { %7339 = vmatpush3.bf16.msra.mxu0 %v8297_v13 }
 0x55d   :  { %7341 = vmatprep.subr.bf16.mxu0 %v8310_v17 }
 0x560   :  { %7343 = vmatpush3.bf16.msra.mxu0 %v8310_v17 }
 0x561   :  { %7345 = vmatprep.subr.bf16.mxu0 %v8315_v19 }
 0x564   :  { %7347 = vmatpush3.bf16.msra.mxu0 %v8315_v19 }
 0x565   :  { %7373 = vmatprep.subr.bf16.mxu0 %v8251_v3 }
 0x62a   :  { %v6392_v2 = vpop.f32.mrb[4].mxu0 }
 0x62b   :  { %v654_v4 = vadd.f32 %v6392_v2, %v8325_v20  ;;  %v648_v8 = vpop.f32.mrb[5].mxu0 }
 0x62c   :  { %v649_v9 = vadd.f32 %v8325_v20, %v648_v8 }
 0x62e   :  { %8039 = vtanh.f32 %v649_v9  ;;  %v1257_v9 = vstv %s5648_s9  ;;  %s5763_s9 = sld [smem:[#allocation2 + $0x17]] }
 0x62f   :  { %8041 = vtanh.f32 %v654_v4 }
 0x638   :  { %v8040_v11 = vpop.eup %8039 }
 0x639   :  { %v8042_v12 = vpop.eup %8041  ;;  %6409 = vmatprep.mubr.msk.f32.mxu0 %vm152_vm1, %v8040_v11 }
 0x63a   :  { %6410 = vmatmul.mubr.msk.f32.vlgmr.msra.gmra.mrb[6].mxu0 %vm152_vm1, %v8042_v12 }
 0x63b   :  { %7375 = vmatpush3.bf16.msra.mxu0 %v8251_v3 }
 0x63c   :  { %7377 = vmatprep.subr.bf16.mxu0 %v8261_v6 }
 0x63f   :  { %7379 = vmatpush3.bf16.msra.mxu0 %v8261_v6 }
 0x640   :  { %7381 = vmatprep.subr.bf16.mxu0 %v8286_v10 }
 0x70d   :  { %v6411_v21 = vpop.f32.mrb[6].mxu0 }
 0x70e   :  { %v737_v22 = vadd.f32 %v6411_v21, %v8338_v27  ;;  %v731_v24 = vpop.f32.mrb[7].mxu0 }
 0x70f   :  { %v732_v26 = vadd.f32 %v8338_v27, %v731_v24 }
 0x710   :  { %v747_v29 = vadd.f32 %v745_v23, %v737_v22 }
 0x711   :  { %v746_v31 = vadd.f32 %v744_v28, %v732_v26 }
 0x712   :  { %v750_v33 = vmul.f32 %v748_v25, %v747_v29 }
 0x713   :  { %v749_v34 = vmul.f32 %v748_v25, %v746_v31 }
 0x714   :  { %v8428_v36 = vadd.f32 %v750_v33, %v8275_v7 }
 0x715   :  { %v8425_v35 = vadd.f32 %v749_v34, %v8259_v5 }
 0x717   :  { %6420 = vmatprep.mubr.msk.f32.mxu1 %vm68_vm0, %v8425_v35 }
 0x718   :  { %6421 = vmatmul.mubr.msk.f32.vlgmr.msra.gmra.mrb[8].mxu1 %vm68_vm0, %v8428_v36 }
 0x719   :  { %7359 = vmatpush3.bf16.msra.mxu1 %v8286_v10 }
 0x71a   :  { %7361 = vmatprep.subr.bf16.mxu1 %v8297_v13 }
 0x71d   :  { %7363 = vmatpush3.bf16.msra.mxu1 %v8297_v13 }
 0x71e   :  { %7365 = vmatprep.subr.bf16.mxu1 %v8310_v17 }
 0x721   :  { %7367 = vmatpush3.bf16.msra.mxu1 %v8310_v17 }
 0x722   :  { %7369 = vmatprep.subr.bf16.mxu1 %v8315_v19 }
 0x725   :  { %7371 = vmatpush3.bf16.msra.mxu1 %v8315_v19 }
 0x726   :  { %7397 = vmatprep.subr.bf16.mxu1 %v8251_v3 }
 0x7eb   :  { %v6422_v5 = vpop.f32.mrb[8].mxu1 }
 0x7ec   :  { %v834_v7 = vadd.f32 %v6422_v5, %v8325_v20  ;;  %v828_v30 = vpop.f32.mrb[9].mxu1 }
 0x7ed   :  { %v829_v32 = vadd.f32 %v8325_v20, %v828_v30 }
 0x7ef   :  { %8043 = vtanh.f32 %v829_v32 }
 0x7f0   :  { %8045 = vtanh.f32 %v834_v7 }
 0x7f9   :  { %v8044_v37 = vpop.eup %8043 }
 0x7fa   :  { %v8046_v38 = vpop.eup %8045  ;;  %6439 = vmatprep.mubr.msk.f32.mxu1 %vm152_vm1, %v8044_v37  ;;  %v1434_v37 = vstv %s5649_s10  ;;  %s8201_s10 = smov [#allocation5]  }
 0x7fb   :  { %6440 = vmatmul.mubr.msk.f32.vlgmr.msra.gmra.mrb[10].mxu1 %vm152_vm1, %v8046_v38 }
 0x7fc   :  { %7399 = vmatpush3.bf16.msra.mxu1 %v8251_v3 }
 0x7fd   :  { %7401 = vmatprep.subr.bf16.mxu1 %v8261_v6 }
 0x800   :  { %7403 = vmatpush3.bf16.msra.mxu1 %v8261_v6 }
 0x801   :  { %7405 = vmatprep.subr.bf16.mxu1 %v8286_v10 }
 0x8ce   :  { %v6441_v39 = vpop.f32.mrb[10].mxu1 }
 0x8cf   :  { %v8451_v41 = vadd.f32 %v6441_v39, %v8338_v27  ;;  %v911_v42 = vpop.f32.mrb[11].mxu1 }
 0x8d0   :  { %v8454_v43 = vadd.f32 %v8338_v27, %v911_v42 }
 0x8d1   :  { %v922_v44 = vmul.f32 %v920_v40, %v8451_v41 }
 0x8d2   :  { %v921_v45 = vmul.f32 %v920_v40, %v8454_v43 }
 0x8d3   :  { %v924_v47 = vadd.f32 %v922_v44, %v8428_v36 }
 0x8d4   :  { %v923_v46 = vadd.f32 %v921_v45, %v8425_v35 }
 0x8d6   :  { %6450 = vmatprep.mubr.msk.f32.mxu0 %vm68_vm0, %v923_v46 }
 0x8d7   :  { %6451 = vmatmul.mubr.msk.f32.vlgmr.msra.gmra.mrb[8].mxu0 %vm68_vm0, %v924_v47 }
 0x8d8   :  { %7383 = vmatpush3.bf16.msra.mxu0 %v8286_v10 }
 0x8d9   :  { %7385 = vmatprep.subr.bf16.mxu0 %v8297_v13 }
 0x8dc   :  { %7387 = vmatpush3.bf16.msra.mxu0 %v8297_v13 }
 0x8dd   :  { %7389 = vmatprep.subr.bf16.mxu0 %v8310_v17 }
 0x8e0   :  { %7391 = vmatpush3.bf16.msra.mxu0 %v8310_v17 }
 0x8e1   :  { %7393 = vmatprep.subr.bf16.mxu0 %v8315_v19 }
 0x8e4   :  { %7395 = vmatpush3.bf16.msra.mxu0 %v8315_v19 }
 0x8e5   :  { %7421 = vmatprep.subr.bf16.mxu0 %v8251_v3 }
 0x9aa   :  { %v6452_v48 = vpop.f32.mrb[8].mxu0 }
 0x9ab   :  { %v1003_v49 = vadd.f32 %v6452_v48, %v8325_v20  ;;  %v997_v50 = vpop.f32.mrb[9].mxu0 }
 0x9ac   :  { %v998_v51 = vadd.f32 %v8325_v20, %v997_v50 }
 0x9ae   :  { %8047 = vtanh.f32 %v998_v51 }
 0x9af   :  { %8049 = vtanh.f32 %v1003_v49 }
 0x9b8   :  { %v8048_v52 = vpop.eup %8047 }
 0x9b9   :  { %v8050_v53 = vpop.eup %8049  ;;  %6469 = vmatprep.mubr.msk.f32.mxu0 %vm152_vm1, %v8048_v52 }
 0x9ba   :  { %6470 = vmatmul.mubr.msk.f32.vlgmr.msra.gmra.mrb[10].mxu0 %vm152_vm1, %v8050_v53  ;;  %v1606_v53 = vstv %s5666_s11 }
 0x9bb   :  { %7423 = vmatpush3.bf16.msra.mxu0 %v8251_v3 }
 0x9bc   :  { %7425 = vmatprep.subr.bf16.mxu0 %v8261_v6 }
 0x9bf   :  { %7427 = vmatpush3.bf16.msra.mxu0 %v8261_v6 }
 0x9c0   :  { %7429 = vmatprep.subr.bf16.mxu0 %v8286_v10 }
 0xa8d   :  { %v6471_v54 = vpop.f32.mrb[10].mxu0 }
 0xa8e   :  { %v8479_v55 = vadd.f32 %v6471_v54, %v8338_v27  ;;  %v1080_v56 = vpop.f32.mrb[11].mxu0 }
 0xa8f   :  { %v8482_v57 = vadd.f32 %v8338_v27, %v1080_v56 }
 0xa90   :  { %v1090_v58 = vmul.f32 %v8479_v55, %v920_v40 }
 0xa91   :  { %v1089_v59 = vmul.f32 %v8482_v57, %v920_v40 }
 0xa92   :  { %v1092_v61 = vadd.f32 %v1090_v58, %v8428_v36 }
 0xa93   :  { %v1091_v60 = vadd.f32 %v1089_v59, %v8425_v35 }
 0xa95   :  { %6480 = vmatprep.mubr.msk.f32.mxu1 %vm68_vm0, %v1091_v60 }
 0xa96   :  { %6481 = vmatmul.mubr.msk.f32.vlgmr.msra.gmra.mrb[12].mxu1 %vm68_vm0, %v1092_v61 }
 0xa97   :  { %7407 = vmatpush3.bf16.msra.mxu1 %v8286_v10 }
 0xa98   :  { %7409 = vmatprep.subr.bf16.mxu1 %v8297_v13 }
 0xa9b   :  { %7411 = vmatpush3.bf16.msra.mxu1 %v8297_v13 }
 0xa9c   :  { %7413 = vmatprep.subr.bf16.mxu1 %v8310_v17 }
 0xa9f   :  { %7415 = vmatpush3.bf16.msra.mxu1 %v8310_v17 }
 0xaa0   :  { %7417 = vmatprep.subr.bf16.mxu1 %v8315_v19 }
 0xaa3   :  { %7419 = vmatpush3.bf16.msra.mxu1 %v8315_v19 }
 0xaa4   :  { %7445 = vmatprep.subr.bf16.mxu1 %v8251_v3 }
 0xb69   :  { %v6482_v62 = vpop.f32.mrb[12].mxu1 }
 0xb6a   :  { %v1171_v63 = vadd.f32 %v6482_v62, %v8325_v20  ;;  %v1165_v0 = vpop.f32.mrb[13].mxu1 }
 0xb6b   :  { %v1166_v1 = vadd.f32 %v8325_v20, %v1165_v0 }
 0xb6d   :  { %8051 = vtanh.f32 %v1166_v1 }
 0xb6e   :  { %8053 = vtanh.f32 %v1171_v63 }
 0xb77   :  { %v8052_v2 = vpop.eup %8051 }
 0xb78   :  { %v8054_v4 = vpop.eup %8053  ;;  %6499 = vmatprep.mubr.msk.f32.mxu1 %vm152_vm1, %v8052_v2 }
 0xb79   :  { %6500 = vmatmul.mubr.msk.f32.vlgmr.msra.gmra.mrb[14].mxu1 %vm152_vm1, %v8054_v4 }
 0xb7a   :  { %7447 = vmatpush3.bf16.msra.mxu1 %v8251_v3 }
 0xb7b   :  { %7449 = vmatprep.subr.bf16.mxu1 %v8261_v6 }
 0xb7e   :  { %7451 = vmatpush3.bf16.msra.mxu1 %v8261_v6 }
 0xb7f   :  { %7453 = vmatprep.subr.bf16.mxu1 %v8286_v10 }
 0xc4c   :  { %v6501_v8 = vpop.f32.mrb[14].mxu1 }
 0xc4d   :  { %v1254_v11 = vadd.f32 %v6501_v8, %v8338_v27  ;;  %v1248_v12 = vpop.f32.mrb[15].mxu1 }
 0xc4e   :  { %v1249_v14 = vadd.f32 %v8338_v27, %v1248_v12 }
 0xc4f   :  { %v1259_v15 = vmul.f32 %v1257_v9, %v1254_v11  ;;  %v1427_v29 = vadd.f32 %v1254_v11, %v8479_v55 }
 0xc50   :  { %v1258_v16 = vmul.f32 %v1257_v9, %v1249_v14  ;;  %v1426_v31 = vadd.f32 %v1249_v14, %v8482_v57 }
 0xc51   :  { %v1261_v21 = vadd.f32 %v1259_v15, %v8428_v36  ;;  %v1429_v33 = vmul.f32 2.0, %v1427_v29 }
 0xc52   :  { %v1260_v18 = vadd.f32 %v1258_v16, %v8425_v35  ;;  %v1428_v34 = vmul.f32 2.0, %v1426_v31 }
 0xc53   :  { %v1431_v30 = vadd.f32 %v1429_v33, %v8451_v41 }
 0xc54   :  { %6510 = vmatprep.mubr.msk.f32.mxu0 %vm68_vm0, %v1260_v18  ;;  %v1430_v39 = vadd.f32 %v1428_v34, %v8454_v43 }
 0xc55   :  { %6511 = vmatmul.mubr.msk.f32.vlgmr.msra.gmra.mrb[12].mxu0 %vm68_vm0, %v1261_v21 }
 0xc56   :  { %7431 = vmatpush3.bf16.msra.mxu0 %v8286_v10 }
 0xc57   :  { %7433 = vmatprep.subr.bf16.mxu0 %v8297_v13 }
 0xc5a   :  { %7435 = vmatpush3.bf16.msra.mxu0 %v8297_v13 }
 0xc5b   :  { %7437 = vmatprep.subr.bf16.mxu0 %v8310_v17 }
 0xc5e   :  { %7439 = vmatpush3.bf16.msra.mxu0 %v8310_v17 }
 0xc5f   :  { %7441 = vmatprep.subr.bf16.mxu0 %v8315_v19 }
 0xc62   :  { %7443 = vmatpush3.bf16.msra.mxu0 %v8315_v19 }
 0xc63   :  { %7469 = vmatprep.subr.bf16.mxu0 %v8251_v3 }
 0xd28   :  { %v6512_v22 = vpop.f32.mrb[12].mxu0 }
 0xd29   :  { %v1340_v23 = vadd.f32 %v6512_v22, %v8325_v20  ;;  %v1334_v24 = vpop.f32.mrb[13].mxu0 }
 0xd2a   :  { %v1335_v25 = vadd.f32 %v8325_v20, %v1334_v24 }
 0xd2c   :  { %8055 = vtanh.f32 %v1335_v25 }
 0xd2d   :  { %8057 = vtanh.f32 %v1340_v23 }
 0xd36   :  { %v8056_v26 = vpop.eup %8055 }
 0xd37   :  { %v8058_v28 = vpop.eup %8057  ;;  %6529 = vmatprep.mubr.msk.f32.mxu0 %vm152_vm1, %v8056_v26 }
 0xd38   :  { %6530 = vmatmul.mubr.msk.f32.vlgmr.msra.gmra.mrb[14].mxu0 %vm152_vm1, %v8058_v28  ;;  %v1943_v28 = vstv %s5667_s12 }
 0xd39   :  { %7471 = vmatpush3.bf16.msra.mxu0 %v8251_v3 }
 0xd3a   :  { %7473 = vmatprep.subr.bf16.mxu0 %v8261_v6 }
 0xd3d   :  { %7475 = vmatpush3.bf16.msra.mxu0 %v8261_v6 }
 0xd3e   :  { %7477 = vmatprep.subr.bf16.mxu0 %v8286_v10 }
 0xe0b   :  { %v6531_v5 = vpop.f32.mrb[14].mxu0 }
 0xe0c   :  { %v1423_v7 = vadd.f32 %v6531_v5, %v8338_v27  ;;  %v1417_v32 = vpop.f32.mrb[15].mxu0 }
 0xe0d   :  { %v1418_v38 = vadd.f32 %v8338_v27, %v1417_v32 }
 0xe0e   :  { %v1433_v40 = vadd.f32 %v1431_v30, %v1423_v7 }
 0xe0f   :  { %v1432_v42 = vadd.f32 %v1430_v39, %v1418_v38 }
 0xe10   :  { %v1436_v44 = vmul.f32 %v1434_v37, %v1433_v40 }
 0xe11   :  { %v1435_v45 = vmul.f32 %v1434_v37, %v1432_v42 }
 0xe12   :  { %v8535_v46 = vadd.f32 %v1436_v44, %v8428_v36 }
 0xe13   :  { %v8538_v47 = vadd.f32 %v1435_v45, %v8425_v35 }
 0xe14   :  { %2813 = vrot.lane.b32.xlu0 %v8535_v46, %s8198_s2 }
 0xe15   :  { %6540 = vmatprep.mubr.msk.f32.mxu1 %vm68_vm0, %v8538_v47 }
 0xe16   :  { %6541 = vmatmul.mubr.msk.f32.vlgmr.msra.gmra.mrb[16].mxu1 %vm68_vm0, %v8535_v46 }
 0xe17   :  { %7455 = vmatpush3.bf16.msra.mxu1 %v8286_v10 }
 0xe18   :  { %2811 = vrot.lane.b32.xlu0 %v8538_v47, %s8198_s2  ;;  %7457 = vmatprep.subr.bf16.mxu1 %v8297_v13 }
 0xe1b   :  { %7459 = vmatpush3.bf16.msra.mxu1 %v8297_v13 }
 0xe1c   :  { %7461 = vmatprep.subr.bf16.mxu1 %v8310_v17 }
 0xe1f   :  { %7463 = vmatpush3.bf16.msra.mxu1 %v8310_v17 }
 0xe20   :  { %7465 = vmatprep.subr.bf16.mxu1 %v8315_v19 }
 0xe23   :  { %7467 = vmatpush3.bf16.msra.mxu1 %v8315_v19 }
 0xe24   :  { %7493 = vmatprep.subr.bf16.mxu1 %v8251_v3 }
 0xee9   :  { %v6542_v41 = vpop.f32.mrb[16].mxu1 }
 0xeea   :  { %v1520_v43 = vadd.f32 %v6542_v41, %v8325_v20  ;;  %v1514_v48 = vpop.f32.mrb[17].mxu1 }
 0xeeb   :  { %v1515_v49 = vadd.f32 %v8325_v20, %v1514_v48 }
 0xeed   :  { %8059 = vtanh.f32 %v1515_v49 }
 0xeee   :  { %8061 = vtanh.f32 %v1520_v43 }
 0xef7   :  { %v8060_v50 = vpop.eup %8059 }
 0xef8   :  { %v8062_v51 = vpop.eup %8061  ;;  %6559 = vmatprep.mubr.msk.f32.mxu1 %vm152_vm1, %v8060_v50 }
 0xef9   :  { %6560 = vmatmul.mubr.msk.f32.vlgmr.msra.gmra.mrb[18].mxu1 %vm152_vm1, %v8062_v51 }
 0xefa   :  { %7495 = vmatpush3.bf16.msra.mxu1 %v8251_v3 }
 0xefb   :  { %7497 = vmatprep.subr.bf16.mxu1 %v8261_v6 }
 0xefe   :  { %7499 = vmatpush3.bf16.msra.mxu1 %v8261_v6 }
 0xeff   :  { %7501 = vmatprep.subr.bf16.mxu1 %v8286_v10 }
 0xfcc   :  { %v6561_v52 = vpop.f32.mrb[18].mxu1 }
 0xfcd   :  { %v8565_v54 = vadd.f32 %v6561_v52, %v8338_v27  ;;  %v1597_v55 = vpop.f32.mrb[19].mxu1  ;;  %v2120_v52 = vstv %s5668_s13 }
 0xfce   :  { %v8568_v56 = vadd.f32 %v8338_v27, %v1597_v55 }
 0xfcf   :  { %v1608_v57 = vmul.f32 %v1606_v53, %v8565_v54 }
 0xfd0   :  { %v1607_v58 = vmul.f32 %v1606_v53, %v8568_v56 }
 0xfd1   :  { %v1610_v60 = vadd.f32 %v1608_v57, %v8535_v46 }
 0xfd2   :  { %v1609_v59 = vadd.f32 %v1607_v58, %v8538_v47 }
 0xfd4   :  { %6570 = vmatprep.mubr.msk.f32.mxu0 %vm68_vm0, %v1609_v59 }
 0xfd5   :  { %6571 = vmatmul.mubr.msk.f32.vlgmr.msra.gmra.mrb[16].mxu0 %vm68_vm0, %v1610_v60 }
 0xfd6   :  { %7479 = vmatpush3.bf16.msra.mxu0 %v8286_v10 }
 0xfd7   :  { %7481 = vmatprep.subr.bf16.mxu0 %v8297_v13 }
 0xfda   :  { %7483 = vmatpush3.bf16.msra.mxu0 %v8297_v13 }
 0xfdb   :  { %7485 = vmatprep.subr.bf16.mxu0 %v8310_v17 }
 0xfde   :  { %7487 = vmatpush3.bf16.msra.mxu0 %v8310_v17 }
 0xfdf   :  { %7489 = vmatprep.subr.bf16.mxu0 %v8315_v19 }
 0xfe2   :  { %7491 = vmatpush3.bf16.msra.mxu0 %v8315_v19 }
 0xfe3   :  { %7517 = vmatprep.subr.bf16.mxu0 %v8251_v3 }
0x10a8   :  { %v6572_v61 = vpop.f32.mrb[16].mxu0 }
0x10a9   :  { %v1689_v62 = vadd.f32 %v6572_v61, %v8325_v20  ;;  %v1683_v63 = vpop.f32.mrb[17].mxu0 }
0x10aa   :  { %v1684_v0 = vadd.f32 %v8325_v20, %v1683_v63 }
0x10ac   :  { %8063 = vtanh.f32 %v1684_v0 }
0x10ad   :  { %8065 = vtanh.f32 %v1689_v62 }
0x10b6   :  { %v8064_v1 = vpop.eup %8063 }
0x10b7   :  { %v8066_v2 = vpop.eup %8065  ;;  %6589 = vmatprep.mubr.msk.f32.mxu0 %vm152_vm1, %v8064_v1 }
0x10b8   :  { %6590 = vmatmul.mubr.msk.f32.vlgmr.msra.gmra.mrb[18].mxu0 %vm152_vm1, %v8066_v2  ;;  %v2292_v2 = vstv %s5685_s15 }
0x10b9   :  { %7519 = vmatpush3.bf16.msra.mxu0 %v8251_v3 }
0x10ba   :  { %7521 = vmatprep.subr.bf16.mxu0 %v8261_v6 }
0x10bd   :  { %7523 = vmatpush3.bf16.msra.mxu0 %v8261_v6 }
0x10be   :  { %7525 = vmatprep.subr.bf16.mxu0 %v8286_v10 }
0x118b   :  { %v6591_v4 = vpop.f32.mrb[18].mxu0 }
0x118c   :  { %v8593_v8 = vadd.f32 %v6591_v4, %v8338_v27  ;;  %v1766_v9 = vpop.f32.mrb[19].mxu0 }
0x118d   :  { %v8596_v11 = vadd.f32 %v8338_v27, %v1766_v9 }
0x118e   :  { %v1776_v12 = vmul.f32 %v8593_v8, %v1606_v53 }
0x118f   :  { %v1775_v14 = vmul.f32 %v8596_v11, %v1606_v53 }
0x1190   :  { %v1778_v16 = vadd.f32 %v1776_v12, %v8535_v46 }
0x1191   :  { %v1777_v15 = vadd.f32 %v1775_v14, %v8538_v47 }
0x1193   :  { %6600 = vmatprep.mubr.msk.f32.mxu1 %vm68_vm0, %v1777_v15 }
0x1194   :  { %6601 = vmatmul.mubr.msk.f32.vlgmr.msra.gmra.mrb[20].mxu1 %vm68_vm0, %v1778_v16 }
0x1195   :  { %7503 = vmatpush3.bf16.msra.mxu1 %v8286_v10 }
0x1196   :  { %7505 = vmatprep.subr.bf16.mxu1 %v8297_v13 }
0x1199   :  { %7507 = vmatpush3.bf16.msra.mxu1 %v8297_v13 }
0x119a   :  { %7509 = vmatprep.subr.bf16.mxu1 %v8310_v17 }
0x119d   :  { %7511 = vmatpush3.bf16.msra.mxu1 %v8310_v17 }
0x119e   :  { %7513 = vmatprep.subr.bf16.mxu1 %v8315_v19 }
0x11a1   :  { %7515 = vmatpush3.bf16.msra.mxu1 %v8315_v19 }
0x11a2   :  { %7541 = vmatprep.subr.bf16.mxu1 %v8251_v3 }
0x1267   :  { %v6602_v18 = vpop.f32.mrb[20].mxu1 }
0x1268   :  { %v1857_v21 = vadd.f32 %v6602_v18, %v8325_v20  ;;  %v1851_v22 = vpop.f32.mrb[21].mxu1 }
0x1269   :  { %v1852_v23 = vadd.f32 %v8325_v20, %v1851_v22 }
0x126b   :  { %8067 = vtanh.f32 %v1852_v23 }
0x126c   :  { %8069 = vtanh.f32 %v1857_v21 }
0x1275   :  { %v8068_v24 = vpop.eup %8067 }
0x1276   :  { %v8070_v25 = vpop.eup %8069  ;;  %6619 = vmatprep.mubr.msk.f32.mxu1 %vm152_vm1, %v8068_v24 }
0x1277   :  { %6620 = vmatmul.mubr.msk.f32.vlgmr.msra.gmra.mrb[22].mxu1 %vm152_vm1, %v8070_v25 }
0x1278   :  { %7543 = vmatpush3.bf16.msra.mxu1 %v8251_v3 }
0x1279   :  { %7545 = vmatprep.subr.bf16.mxu1 %v8261_v6 }
0x127c   :  { %7547 = vmatpush3.bf16.msra.mxu1 %v8261_v6 }
0x127d   :  { %7549 = vmatprep.subr.bf16.mxu1 %v8286_v10 }
0x134a   :  { %v6621_v26 = vpop.f32.mrb[22].mxu1 }
0x134b   :  { %v1940_v29 = vadd.f32 %v6621_v26, %v8338_v27  ;;  %v1934_v31 = vpop.f32.mrb[23].mxu1 }
0x134c   :  { %v1935_v33 = vadd.f32 %v8338_v27, %v1934_v31 }
0x134d   :  { %v1945_v34 = vmul.f32 %v1943_v28, %v1940_v29  ;;  %v2113_v44 = vadd.f32 %v1940_v29, %v8593_v8 }
0x134e   :  { %v1944_v5 = vmul.f32 %v1943_v28, %v1935_v33  ;;  %v2112_v45 = vadd.f32 %v1935_v33, %v8596_v11 }
0x134f   :  { %v1947_v30 = vadd.f32 %v1945_v34, %v8535_v46  ;;  %v2115_v41 = vmul.f32 2.0, %v2113_v44 }
0x1350   :  { %v1946_v7 = vadd.f32 %v1944_v5, %v8538_v47  ;;  %v2114_v43 = vmul.f32 2.0, %v2112_v45 }
0x1351   :  { %v2117_v50 = vadd.f32 %v2115_v41, %v8565_v54 }
0x1352   :  { %6630 = vmatprep.mubr.msk.f32.mxu0 %vm68_vm0, %v1946_v7  ;;  %v2116_v55 = vadd.f32 %v2114_v43, %v8568_v56 }
0x1353   :  { %6631 = vmatmul.mubr.msk.f32.vlgmr.msra.gmra.mrb[20].mxu0 %vm68_vm0, %v1947_v30 }
0x1354   :  { %7527 = vmatpush3.bf16.msra.mxu0 %v8286_v10 }
0x1355   :  { %7529 = vmatprep.subr.bf16.mxu0 %v8297_v13 }
0x1358   :  { %7531 = vmatpush3.bf16.msra.mxu0 %v8297_v13 }
0x1359   :  { %7533 = vmatprep.subr.bf16.mxu0 %v8310_v17 }
0x135c   :  { %7535 = vmatpush3.bf16.msra.mxu0 %v8310_v17 }
0x135d   :  { %7537 = vmatprep.subr.bf16.mxu0 %v8315_v19 }
0x1360   :  { %7539 = vmatpush3.bf16.msra.mxu0 %v8315_v19 }
0x1361   :  { %7565 = vmatprep.subr.bf16.mxu0 %v8251_v3 }
0x1426   :  { %v6632_v32 = vpop.f32.mrb[20].mxu0 }
0x1427   :  { %v2026_v37 = vadd.f32 %v6632_v32, %v8325_v20  ;;  %v2020_v38 = vpop.f32.mrb[21].mxu0 }
0x1428   :  { %v2021_v39 = vadd.f32 %v8325_v20, %v2020_v38 }
0x142a   :  { %8071 = vtanh.f32 %v2021_v39 }
0x142b   :  { %8073 = vtanh.f32 %v2026_v37 }
0x1434   :  { %v8072_v40 = vpop.eup %8071 }
0x1435   :  { %v8074_v42 = vpop.eup %8073  ;;  %6649 = vmatprep.mubr.msk.f32.mxu0 %vm152_vm1, %v8072_v40 }
0x1436   :  { %6650 = vmatmul.mubr.msk.f32.vlgmr.msra.gmra.mrb[22].mxu0 %vm152_vm1, %v8074_v42  ;;  %v2629_v42 = vstv %s5686_s1 }
0x1437   :  { %7567 = vmatpush3.bf16.msra.mxu0 %v8251_v3 }
0x1438   :  { %7569 = vmatprep.subr.bf16.mxu0 %v8261_v6 }
0x143b   :  { %7571 = vmatpush3.bf16.msra.mxu0 %v8261_v6 }
0x143c   :  { %7573 = vmatprep.subr.bf16.mxu0 %v8286_v10 }
0x1509   :  { %v6651_v48 = vpop.f32.mrb[22].mxu0 }
0x150a   :  { %v2109_v49 = vadd.f32 %v6651_v48, %v8338_v27  ;;  %v2103_v51 = vpop.f32.mrb[23].mxu0 }
0x150b   :  { %v2104_v53 = vadd.f32 %v8338_v27, %v2103_v51 }
0x150c   :  { %v2119_v57 = vadd.f32 %v2117_v50, %v2109_v49  ;;  %v8751_v50 = vld [vmem:[%s9251_s3] ss:$0 sm:$0xff] }
0x150d   :  { %v2118_v58 = vadd.f32 %v2116_v55, %v2104_v53 }
0x150e   :  { %v2122_v59 = vmul.f32 %v2120_v52, %v2119_v57 }
0x150f   :  { %v2121_v60 = vmul.f32 %v2120_v52, %v2118_v58 }
0x1510   :  { %v8649_v61 = vadd.f32 %v2122_v59, %v8535_v46 }
0x1511   :  { %v8652_v62 = vadd.f32 %v2121_v60, %v8538_v47 }
0x1512   :  { %2819 = vrot.lane.b32.xlu1 %v8649_v61, %s8199_s14 }
0x1513   :  { %2817 = vrot.lane.b32.xlu0 %v8652_v62, %s8199_s14  ;;  %6660 = vmatprep.mubr.msk.f32.mxu1 %vm68_vm0, %v8652_v62 }
0x1514   :  { %6661 = vmatmul.mubr.msk.f32.vlgmr.msra.gmra.mrb[24].mxu1 %vm68_vm0, %v8649_v61 }
0x1515   :  { %7551 = vmatpush3.bf16.msra.mxu1 %v8286_v10 }
0x1516   :  { %7553 = vmatprep.subr.bf16.mxu1 %v8297_v13 }
0x1519   :  { %7555 = vmatpush3.bf16.msra.mxu1 %v8297_v13 }
0x151a   :  { %7557 = vmatprep.subr.bf16.mxu1 %v8310_v17 }
0x151d   :  { %7559 = vmatpush3.bf16.msra.mxu1 %v8310_v17 }
0x151e   :  { %7561 = vmatprep.subr.bf16.mxu1 %v8315_v19 }
0x1521   :  { %7563 = vmatpush3.bf16.msra.mxu1 %v8315_v19 }
0x1522   :  { %7589 = vmatprep.subr.bf16.mxu1 %v8251_v3 }
0x15e7   :  { %v6662_v46 = vpop.f32.mrb[24].mxu1 }
0x15e8   :  { %v2206_v47 = vadd.f32 %v6662_v46, %v8325_v20  ;;  %v2200_v54 = vpop.f32.mrb[25].mxu1 }
0x15e9   :  { %v2201_v56 = vadd.f32 %v8325_v20, %v2200_v54  ;;  %v8766_v54 = vld [vmem:[%s9253_s5] ss:$0 sm:$0xff] }
0x15eb   :  { %8075 = vtanh.f32 %v2201_v56 }
0x15ec   :  { %8077 = vtanh.f32 %v2206_v47 }
0x15f5   :  { %v8076_v63 = vpop.eup %8075 }
0x15f6   :  { %v8078_v0 = vpop.eup %8077  ;;  %6679 = vmatprep.mubr.msk.f32.mxu1 %vm152_vm1, %v8076_v63 }
0x15f7   :  { %6680 = vmatmul.mubr.msk.f32.vlgmr.msra.gmra.mrb[26].mxu1 %vm152_vm1, %v8078_v0 }
0x15f8   :  { %7591 = vmatpush3.bf16.msra.mxu1 %v8251_v3 }
0x15f9   :  { %7593 = vmatprep.subr.bf16.mxu1 %v8261_v6 }
0x15fc   :  { %7595 = vmatpush3.bf16.msra.mxu1 %v8261_v6 }
0x15fd   :  { %7597 = vmatprep.subr.bf16.mxu1 %v8286_v10 }
0x16ca   :  { %v6681_v1 = vpop.f32.mrb[26].mxu1 }
0x16cb   :  { %v8679_v4 = vadd.f32 %v6681_v1, %v8338_v27  ;;  %v2283_v8 = vpop.f32.mrb[27].mxu1  ;;  %v2806_v1 = vstv %s5687_s18 }
0x16cc   :  { %v8682_v9 = vadd.f32 %v8338_v27, %v2283_v8 }
0x16cd   :  { %v2294_v11 = vmul.f32 %v2292_v2, %v8679_v4 }
0x16ce   :  { %v2293_v12 = vmul.f32 %v2292_v2, %v8682_v9 }
0x16cf   :  { %v2296_v15 = vadd.f32 %v2294_v11, %v8649_v61 }
0x16d0   :  { %v2295_v14 = vadd.f32 %v2293_v12, %v8652_v62 }
0x16d2   :  { %6690 = vmatprep.mubr.msk.f32.mxu0 %vm68_vm0, %v2295_v14 }
0x16d3   :  { %6691 = vmatmul.mubr.msk.f32.vlgmr.msra.gmra.mrb[24].mxu0 %vm68_vm0, %v2296_v15 }
0x16d4   :  { %7575 = vmatpush3.bf16.msra.mxu0 %v8286_v10 }
0x16d5   :  { %7577 = vmatprep.subr.bf16.mxu0 %v8297_v13 }
0x16d8   :  { %7579 = vmatpush3.bf16.msra.mxu0 %v8297_v13 }
0x16d9   :  { %7581 = vmatprep.subr.bf16.mxu0 %v8310_v17 }
0x16dc   :  { %7583 = vmatpush3.bf16.msra.mxu0 %v8310_v17 }
0x16dd   :  { %7585 = vmatprep.subr.bf16.mxu0 %v8315_v19 }
0x16e0   :  { %7587 = vmatpush3.bf16.msra.mxu0 %v8315_v19 }
0x16e1   :  { %7613 = vmatprep.subr.bf16.mxu0 %v8251_v3 }
0x17a6   :  { %v6692_v16 = vpop.f32.mrb[24].mxu0 }
0x17a7   :  { %v2375_v18 = vadd.f32 %v6692_v16, %v8325_v20  ;;  %v2369_v21 = vpop.f32.mrb[25].mxu0 }
0x17a8   :  { %v2370_v22 = vadd.f32 %v8325_v20, %v2369_v21 }
0x17aa   :  { %8079 = vtanh.f32 %v2370_v22 }
0x17ab   :  { %8081 = vtanh.f32 %v2375_v18 }
0x17b4   :  { %v8080_v23 = vpop.eup %8079 }
0x17b5   :  { %v8082_v24 = vpop.eup %8081  ;;  %6709 = vmatprep.mubr.msk.f32.mxu0 %vm152_vm1, %v8080_v23 }
0x17b6   :  { %6710 = vmatmul.mubr.msk.f32.vlgmr.msra.gmra.mrb[26].mxu0 %vm152_vm1, %v8082_v24 }
0x17b7   :  { %7615 = vmatpush3.bf16.msra.mxu0 %v8251_v3 }
0x17b8   :  { %7617 = vmatprep.subr.bf16.mxu0 %v8261_v6 }
0x17bb   :  { %7619 = vmatpush3.bf16.msra.mxu0 %v8261_v6 }
0x17bc   :  { %7621 = vmatprep.subr.bf16.mxu0 %v8286_v10 }
0x1889   :  { %v6711_v25 = vpop.f32.mrb[26].mxu0 }
0x188a   :  { %v8707_v26 = vadd.f32 %v6711_v25, %v8338_v27  ;;  %v2452_v28 = vpop.f32.mrb[27].mxu0 }
0x188b   :  { %v8710_v29 = vadd.f32 %v8338_v27, %v2452_v28 }
0x188c   :  { %v2462_v31 = vmul.f32 %v8707_v26, %v2292_v2 }
0x188d   :  { %v2461_v33 = vmul.f32 %v8710_v29, %v2292_v2 }
0x188e   :  { %v2464_v5 = vadd.f32 %v2462_v31, %v8649_v61 }
0x188f   :  { %v2463_v34 = vadd.f32 %v2461_v33, %v8652_v62 }
0x1891   :  { %6720 = vmatprep.mubr.msk.f32.mxu1 %vm68_vm0, %v2463_v34 }
0x1892   :  { %6721 = vmatmul.mubr.msk.f32.vlgmr.msra.gmra.mrb[28].mxu1 %vm68_vm0, %v2464_v5 }
0x1893   :  { %7599 = vmatpush3.bf16.msra.mxu1 %v8286_v10 }
0x1894   :  { %7601 = vmatprep.subr.bf16.mxu1 %v8297_v13 }
0x1897   :  { %7603 = vmatpush3.bf16.msra.mxu1 %v8297_v13 }
0x1898   :  { %7605 = vmatprep.subr.bf16.mxu1 %v8310_v17 }
0x189b   :  { %7607 = vmatpush3.bf16.msra.mxu1 %v8310_v17 }
0x189c   :  { %7609 = vmatprep.subr.bf16.mxu1 %v8315_v19 }
0x189f   :  { %7611 = vmatpush3.bf16.msra.mxu1 %v8315_v19 }
0x18a0   :  { %7637 = vmatprep.subr.bf16.mxu1 %v8251_v3 }
0x1965   :  { %v6722_v7 = vpop.f32.mrb[28].mxu1 }
0x1966   :  { %v2543_v30 = vadd.f32 %v6722_v7, %v8325_v20  ;;  %v2537_v32 = vpop.f32.mrb[29].mxu1 }
0x1967   :  { %v2538_v37 = vadd.f32 %v8325_v20, %v2537_v32 }
0x1969   :  { %8083 = vtanh.f32 %v2538_v37 }
0x196a   :  { %8085 = vtanh.f32 %v2543_v30  ;;  %v3005_v30 = vstv %s5704_s22 }
0x1973   :  { %v8084_v38 = vpop.eup %8083 }
0x1974   :  { %v8086_v39 = vpop.eup %8085  ;;  %6739 = vmatprep.mubr.msk.f32.mxu1 %vm152_vm1, %v8084_v38 }
0x1975   :  { %6740 = vmatmul.mubr.msk.f32.vlgmr.msra.gmra.mrb[30].mxu1 %vm152_vm1, %v8086_v39 }
0x1976   :  { %7639 = vmatpush3.bf16.msra.mxu1 %v8251_v3 }
0x1977   :  { %7641 = vmatprep.subr.bf16.mxu1 %v8261_v6 }
0x197a   :  { %7643 = vmatpush3.bf16.msra.mxu1 %v8261_v6 }
0x197b   :  { %7645 = vmatprep.subr.bf16.mxu1 %v8286_v10 }
0x1a48   :  { %v6741_v40 = vpop.f32.mrb[30].mxu1 }
0x1a49   :  { %v2626_v20 = vadd.f32 %v6741_v40, %v8338_v27  ;;  %v2620_v44 = vpop.f32.mrb[31].mxu1 }
0x1a4a   :  { %v2621_v45 = vadd.f32 %v8338_v27, %v2620_v44 }
0x1a4b   :  { %v2631_v41 = vmul.f32 %v2629_v42, %v2626_v20  ;;  %v2799_v58 = vadd.f32 %v2626_v20, %v8707_v26 }
0x1a4c   :  { %v2630_v43 = vmul.f32 %v2629_v42, %v2621_v45  ;;  %v2798_v59 = vadd.f32 %v2621_v45, %v8710_v29 }
0x1a4d   :  { %v2633_v49 = vadd.f32 %v2631_v41, %v8649_v61  ;;  %v2801_v60 = vmul.f32 2.0, %v2799_v58 }
0x1a4e   :  { %v2632_v48 = vadd.f32 %v2630_v43, %v8652_v62  ;;  %v2800_v46 = vmul.f32 2.0, %v2798_v59 }
0x1a4f   :  { %v2803_v63 = vadd.f32 %v2801_v60, %v8679_v4  ;;  %v2820_v4 = vpop.permute.xlu1 %2819 }
0x1a50   :  { %6750 = vmatprep.mubr.msk.f32.mxu0 %vm68_vm0, %v2632_v48  ;;  %v2802_v8 = vadd.f32 %v2800_v46, %v8682_v9 }
0x1a51   :  { %6751 = vmatmul.mubr.msk.f32.vlgmr.msra.gmra.mrb[28].mxu0 %vm68_vm0, %v2633_v49 }
0x1a52   :  { %7623 = vmatpush3.bf16.msra.mxu0 %v8286_v10 }
0x1a53   :  { %7625 = vmatprep.subr.bf16.mxu0 %v8297_v13 }
0x1a56   :  { %7627 = vmatpush3.bf16.msra.mxu0 %v8297_v13 }
0x1a57   :  { %7629 = vmatprep.subr.bf16.mxu0 %v8310_v17 }
0x1a5a   :  { %7631 = vmatpush3.bf16.msra.mxu0 %v8310_v17 }
0x1a5b   :  { %7633 = vmatprep.subr.bf16.mxu0 %v8315_v19 }
0x1a5e   :  { %7635 = vmatpush3.bf16.msra.mxu0 %v8315_v19 }
0x1a5f   :  { %7661 = vmatprep.subr.bf16.mxu0 %v8251_v3 }
0x1b24   :  { %v6752_v27 = vpop.f32.mrb[28].mxu0 }
0x1b25   :  { %v2712_v51 = vadd.f32 %v8751_v50, %v6752_v27  ;;  %v2706_v52 = vpop.f32.mrb[29].mxu0 }
0x1b26   :  { %v2707_v53 = vadd.f32 %v8751_v50, %v2706_v52 }
0x1b28   :  { %8087 = vtanh.f32 %v2707_v53 }
0x1b29   :  { %8089 = vtanh.f32 %v2712_v51 }
0x1b32   :  { %v8088_v55 = vpop.eup %8087 }
0x1b33   :  { %v8090_v57 = vpop.eup %8089  ;;  %6769 = vmatprep.mubr.msk.f32.mxu0 %vm152_vm1, %v8088_v55 }
0x1b34   :  { %6770 = vmatmul.mubr.msk.f32.vlgmr.msra.gmra.mrb[30].mxu0 %vm152_vm1, %v8090_v57 }
0x1b35   :  { %7663 = vmatpush3.bf16.msra.mxu0 %v8251_v3 }
0x1b36   :  { %7665 = vmatprep.subr.bf16.mxu0 %v8261_v6 }
0x1b39   :  { %7667 = vmatpush3.bf16.msra.mxu0 %v8261_v6 }
0x1b3a   :  { %7669 = vmatprep.subr.bf16.mxu0 %v8286_v10 }
0x1c07   :  { %v6771_v47 = vpop.f32.mrb[30].mxu0 }
0x1c08   :  { %v2795_v56 = vadd.f32 %v8766_v54, %v6771_v47  ;;  %v2789_v0 = vpop.f32.mrb[31].mxu0 }
0x1c09   :  { %v2790_v2 = vadd.f32 %v8766_v54, %v2789_v0 }
0x1c0a   :  { %v2805_v11 = vadd.f32 %v2803_v63, %v2795_v56 }
0x1c0b   :  { %v2804_v12 = vadd.f32 %v2802_v8, %v2790_v2  ;;  %v3342_v2 = vstv %s5705_s23 }
0x1c0c   :  { %v2808_v14 = vmul.f32 %v2806_v1, %v2805_v11 }
0x1c0d   :  { %v2807_v15 = vmul.f32 %v2806_v1, %v2804_v12 }
0x1c0e   :  { %v8773_v16 = vadd.f32 %v2808_v14, %v8649_v61  ;;  %v2814_v61 = vpop.permute.xlu0 %2813 }
0x1c0f   :  { %v8776_v18 = vadd.f32 %v2807_v15, %v8652_v62  ;;  %v2832_v21 = vsel %vm68_vm0, %v8428_v36, %v2814_v61 }
0x1c10   :  { %2827 = vrot.lane.b32.xlu1 %v8773_v16, %s8200_s21  ;;  %v2834_v23 = vsel %vm152_vm1, %v2832_v21, %v2820_v4 }
0x1c11   :  { %2825 = vrot.lane.b32.xlu0 %v8776_v18, %s8200_s21  ;;  %6780 = vmatprep.mubr.msk.f32.mxu1 %vm68_vm0, %v8776_v18 }
0x1c12   :  { %6781 = vmatmul.mubr.msk.f32.vlgmr.msra.gmra.mrb[32].mxu1 %vm68_vm0, %v8773_v16  ;;  %v2812_v62 = vpop.permute.xlu0 %2811 }
0x1c13   :  { %7647 = vmatpush3.bf16.msra.mxu1 %v8286_v10  ;;  %v2831_v22 = vsel %vm68_vm0, %v8425_v35, %v2812_v62 }
0x1c14   :  { %7649 = vmatprep.subr.bf16.mxu1 %v8297_v13 }
0x1c16   :  { %v2818_v9 = vpop.permute.xlu0 %2817 }
0x1c17   :  { %7651 = vmatpush3.bf16.msra.mxu1 %v8297_v13  ;;  %v2833_v25 = vsel %vm152_vm1, %v2831_v22, %v2818_v9 }
0x1c18   :  { %7653 = vmatprep.subr.bf16.mxu1 %v8310_v17 }
0x1c1b   :  { %7655 = vmatpush3.bf16.msra.mxu1 %v8310_v17 }
0x1c1c   :  { %7657 = vmatprep.subr.bf16.mxu1 %v8315_v19 }
0x1c1f   :  { %7659 = vmatpush3.bf16.msra.mxu1 %v8315_v19 }
0x1c20   :  { %7685 = vmatprep.subr.bf16.mxu1 %v8251_v3 }
0x1c82   :  { %v2828_v24 = vpop.permute.xlu1 %2827 }
0x1c83   :  { %v2837_v26 = vsel %vm2835_vm2, %v2834_v23, %v2828_v24  ;;  %v2826_v28 = vpop.permute.xlu0 %2825 }
0x1c84   :  { %2839 = vst [vmem:[#allocation5 + $0x10] sm:$0xff] %v2837_v26  ;;  %v2836_v29 = vsel %vm2835_vm2, %v2833_v25, %v2826_v28 }
0x1c85   :  { %2838 = vst [vmem:[#allocation5] sm:$0xff] %v2836_v29 }
0x1ce5   :  { %v6782_v31 = vpop.f32.mrb[32].mxu1 }
0x1ce6   :  { %v2919_v33 = vadd.f32 %v8751_v50, %v6782_v31  ;;  %v2913_v34 = vpop.f32.mrb[33].mxu1 }
0x1ce7   :  { %v2914_v36 = vadd.f32 %v8751_v50, %v2913_v34 }
0x1ce9   :  { %8091 = vtanh.f32 %v2914_v36 }
0x1cea   :  { %8093 = vtanh.f32 %v2919_v33 }
0x1cf3   :  { %v8092_v35 = vpop.eup %8091 }
0x1cf4   :  { %v8094_v5 = vpop.eup %8093  ;;  %6799 = vmatprep.mubr.msk.f32.mxu1 %vm152_vm1, %v8092_v35  ;;  %v3519_v35 = vstv %s5706_s24 }
0x1cf5   :  { %6800 = vmatmul.mubr.msk.f32.vlgmr.msra.gmra.mrb[34].mxu1 %vm152_vm1, %v8094_v5 }
0x1cf6   :  { %7687 = vmatpush3.bf16.msra.mxu1 %v8251_v3 }
0x1cf7   :  { %7689 = vmatprep.subr.bf16.mxu1 %v8261_v6 }
0x1cfa   :  { %7691 = vmatpush3.bf16.msra.mxu1 %v8261_v6 }
0x1cfb   :  { %7693 = vmatprep.subr.bf16.mxu1 %v8286_v10 }
0x1dc8   :  { %v6801_v7 = vpop.f32.mrb[34].mxu1 }
0x1dc9   :  { %v8811_v32 = vadd.f32 %v8766_v54, %v6801_v7  ;;  %v2996_v37 = vpop.f32.mrb[35].mxu1 }
0x1dca   :  { %v8814_v38 = vadd.f32 %v8766_v54, %v2996_v37 }
0x1dcb   :  { %v3007_v39 = vmul.f32 %v3005_v30, %v8811_v32 }
0x1dcc   :  { %v3006_v40 = vmul.f32 %v3005_v30, %v8814_v38 }
0x1dcd   :  { %v3009_v20 = vadd.f32 %v3007_v39, %v8773_v16 }
0x1dce   :  { %v3008_v42 = vadd.f32 %v3006_v40, %v8776_v18 }
0x1dd0   :  { %6810 = vmatprep.mubr.msk.f32.mxu0 %vm68_vm0, %v3008_v42 }
0x1dd1   :  { %6811 = vmatmul.mubr.msk.f32.vlgmr.msra.gmra.mrb[32].mxu0 %vm68_vm0, %v3009_v20 }
0x1dd2   :  { %7671 = vmatpush3.bf16.msra.mxu0 %v8286_v10 }
0x1dd3   :  { %7673 = vmatprep.subr.bf16.mxu0 %v8297_v13 }
0x1dd6   :  { %7675 = vmatpush3.bf16.msra.mxu0 %v8297_v13 }
0x1dd7   :  { %7677 = vmatprep.subr.bf16.mxu0 %v8310_v17 }
0x1dda   :  { %7679 = vmatpush3.bf16.msra.mxu0 %v8310_v17 }
0x1ddb   :  { %7681 = vmatprep.subr.bf16.mxu0 %v8315_v19 }
0x1dde   :  { %7683 = vmatpush3.bf16.msra.mxu0 %v8315_v19 }
0x1ddf   :  { %7709 = vmatprep.subr.bf16.mxu0 %v8251_v3 }
0x1ea4   :  { %v6812_v44 = vpop.f32.mrb[32].mxu0 }
0x1ea5   :  { %v3088_v45 = vadd.f32 %v8751_v50, %v6812_v44  ;;  %v3082_v41 = vpop.f32.mrb[33].mxu0 }
0x1ea6   :  { %v3083_v43 = vadd.f32 %v8751_v50, %v3082_v41 }
0x1ea8   :  { %8095 = vtanh.f32 %v3083_v43  ;;  %v3691_v43 = vstv %s5723_s25 }
0x1ea9   :  { %8097 = vtanh.f32 %v3088_v45 }
0x1eb2   :  { %v8096_v48 = vpop.eup %8095 }
0x1eb3   :  { %v8098_v49 = vpop.eup %8097  ;;  %6829 = vmatprep.mubr.msk.f32.mxu0 %vm152_vm1, %v8096_v48 }
0x1eb4   :  { %6830 = vmatmul.mubr.msk.f32.vlgmr.msra.gmra.mrb[34].mxu0 %vm152_vm1, %v8098_v49 }
0x1eb5   :  { %7711 = vmatpush3.bf16.msra.mxu0 %v8251_v3 }
0x1eb6   :  { %7713 = vmatprep.subr.bf16.mxu0 %v8261_v6 }
0x1eb9   :  { %7715 = vmatpush3.bf16.msra.mxu0 %v8261_v6 }
0x1eba   :  { %7717 = vmatprep.subr.bf16.mxu0 %v8286_v10 }
0x1f87   :  { %v6831_v27 = vpop.f32.mrb[34].mxu0 }
0x1f88   :  { %v8839_v51 = vadd.f32 %v8766_v54, %v6831_v27  ;;  %v3165_v52 = vpop.f32.mrb[35].mxu0 }
0x1f89   :  { %v8842_v53 = vadd.f32 %v8766_v54, %v3165_v52 }
0x1f8a   :  { %v3175_v55 = vmul.f32 %v8839_v51, %v3005_v30 }
0x1f8b   :  { %v3174_v57 = vmul.f32 %v8842_v53, %v3005_v30 }
0x1f8c   :  { %v3177_v59 = vadd.f32 %v3175_v55, %v8773_v16 }
0x1f8d   :  { %v3176_v58 = vadd.f32 %v3174_v57, %v8776_v18 }
0x1f8f   :  { %6840 = vmatprep.mubr.msk.f32.mxu1 %vm68_vm0, %v3176_v58 }
0x1f90   :  { %6841 = vmatmul.mubr.msk.f32.vlgmr.msra.gmra.mrb[36].mxu1 %vm68_vm0, %v3177_v59 }
0x1f91   :  { %7695 = vmatpush3.bf16.msra.mxu1 %v8286_v10 }
0x1f92   :  { %7697 = vmatprep.subr.bf16.mxu1 %v8297_v13 }
0x1f95   :  { %7699 = vmatpush3.bf16.msra.mxu1 %v8297_v13 }
0x1f96   :  { %7701 = vmatprep.subr.bf16.mxu1 %v8310_v17 }
0x1f99   :  { %7703 = vmatpush3.bf16.msra.mxu1 %v8310_v17 }
0x1f9a   :  { %7705 = vmatprep.subr.bf16.mxu1 %v8315_v19 }
0x1f9d   :  { %7707 = vmatpush3.bf16.msra.mxu1 %v8315_v19 }
0x1f9e   :  { %7733 = vmatprep.subr.bf16.mxu1 %v8251_v3 }
0x2063   :  { %v6842_v60 = vpop.f32.mrb[36].mxu1 }
0x2064   :  { %v3256_v46 = vadd.f32 %v8751_v50, %v6842_v60  ;;  %v3250_v47 = vpop.f32.mrb[37].mxu1 }
0x2065   :  { %v3251_v56 = vadd.f32 %v8751_v50, %v3250_v47 }
0x2067   :  { %8099 = vtanh.f32 %v3251_v56 }
0x2068   :  { %8101 = vtanh.f32 %v3256_v46 }
0x2071   :  { %v8100_v63 = vpop.eup %8099 }
0x2072   :  { %v8102_v0 = vpop.eup %8101  ;;  %6859 = vmatprep.mubr.msk.f32.mxu1 %vm152_vm1, %v8100_v63 }
0x2073   :  { %6860 = vmatmul.mubr.msk.f32.vlgmr.msra.gmra.mrb[38].mxu1 %vm152_vm1, %v8102_v0 }
0x2074   :  { %7735 = vmatpush3.bf16.msra.mxu1 %v8251_v3 }
0x2075   :  { %7737 = vmatprep.subr.bf16.mxu1 %v8261_v6 }
0x2078   :  { %7739 = vmatpush3.bf16.msra.mxu1 %v8261_v6 }
0x2079   :  { %7741 = vmatprep.subr.bf16.mxu1 %v8286_v10 }
0x2146   :  { %v6861_v1 = vpop.f32.mrb[38].mxu1 }
0x2147   :  { %v3339_v8 = vadd.f32 %v8766_v54, %v6861_v1  ;;  %v3333_v11 = vpop.f32.mrb[39].mxu1 }
0x2148   :  { %v3334_v12 = vadd.f32 %v8766_v54, %v3333_v11 }
0x2149   :  { %v3344_v14 = vmul.f32 %v3342_v2, %v3339_v8  ;;  %v3512_v25 = vadd.f32 %v3339_v8, %v8839_v51 }
0x214a   :  { %v3343_v15 = vmul.f32 %v3342_v2, %v3334_v12  ;;  %v3511_v26 = vadd.f32 %v3334_v12, %v8842_v53 }
0x214b   :  { %v3346_v62 = vadd.f32 %v3344_v14, %v8773_v16  ;;  %v3514_v28 = vmul.f32 2.0, %v3512_v25 }
0x214c   :  { %v3345_v61 = vadd.f32 %v3343_v15, %v8776_v18  ;;  %v3513_v29 = vmul.f32 2.0, %v3511_v26 }
0x214d   :  { %v3516_v34 = vadd.f32 %v3514_v28, %v8811_v32 }
0x214e   :  { %6870 = vmatprep.mubr.msk.f32.mxu0 %vm68_vm0, %v3345_v61  ;;  %v3515_v7 = vadd.f32 %v3513_v29, %v8814_v38 }
0x214f   :  { %6871 = vmatmul.mubr.msk.f32.vlgmr.msra.gmra.mrb[36].mxu0 %vm68_vm0, %v3346_v62 }
0x2150   :  { %7719 = vmatpush3.bf16.msra.mxu0 %v8286_v10 }
0x2151   :  { %7721 = vmatprep.subr.bf16.mxu0 %v8297_v13 }
0x2154   :  { %7723 = vmatpush3.bf16.msra.mxu0 %v8297_v13 }
0x2155   :  { %7725 = vmatprep.subr.bf16.mxu0 %v8310_v17 }
0x2158   :  { %7727 = vmatpush3.bf16.msra.mxu0 %v8310_v17 }
0x2159   :  { %7729 = vmatprep.subr.bf16.mxu0 %v8315_v19 }
0x215c   :  { %7731 = vmatpush3.bf16.msra.mxu0 %v8315_v19 }
0x215d   :  { %7757 = vmatprep.subr.bf16.mxu0 %v8251_v3 }
0x2222   :  { %v6872_v4 = vpop.f32.mrb[36].mxu0 }
0x2223   :  { %v3425_v9 = vadd.f32 %v8751_v50, %v6872_v4  ;;  %v3419_v21 = vpop.f32.mrb[37].mxu0 }
0x2224   :  { %v3420_v22 = vadd.f32 %v8751_v50, %v3419_v21 }
0x2226   :  { %8103 = vtanh.f32 %v3420_v22  ;;  %v4028_v22 = vstv %s5724_s26 }
0x2227   :  { %8105 = vtanh.f32 %v3425_v9 }
0x2230   :  { %v8104_v23 = vpop.eup %8103 }
0x2231   :  { %v8106_v24 = vpop.eup %8105  ;;  %6889 = vmatprep.mubr.msk.f32.mxu0 %vm152_vm1, %v8104_v23 }
0x2232   :  { %6890 = vmatmul.mubr.msk.f32.vlgmr.msra.gmra.mrb[38].mxu0 %vm152_vm1, %v8106_v24 }
0x2233   :  { %7759 = vmatpush3.bf16.msra.mxu0 %v8251_v3 }
0x2234   :  { %7761 = vmatprep.subr.bf16.mxu0 %v8261_v6 }
0x2237   :  { %7763 = vmatpush3.bf16.msra.mxu0 %v8261_v6 }
0x2238   :  { %7765 = vmatprep.subr.bf16.mxu0 %v8286_v10 }
0x2305   :  { %v6891_v31 = vpop.f32.mrb[38].mxu0 }
0x2306   :  { %v3508_v33 = vadd.f32 %v8766_v54, %v6891_v31  ;;  %v3502_v36 = vpop.f32.mrb[39].mxu0 }
0x2307   :  { %v3503_v5 = vadd.f32 %v8766_v54, %v3502_v36 }
0x2308   :  { %v3518_v30 = vadd.f32 %v3516_v34, %v3508_v33 }
0x2309   :  { %v3517_v37 = vadd.f32 %v3515_v7, %v3503_v5 }
0x230a   :  { %v3521_v39 = vmul.f32 %v3519_v35, %v3518_v30 }
0x230b   :  { %v3520_v40 = vmul.f32 %v3519_v35, %v3517_v37 }
0x230c   :  { %v8898_v20 = vadd.f32 %v3521_v39, %v8773_v16 }
0x230d   :  { %v8895_v42 = vadd.f32 %v3520_v40, %v8776_v18 }
0x230f   :  { %6900 = vmatprep.mubr.msk.f32.mxu1 %vm68_vm0, %v8895_v42 }
0x2310   :  { %6901 = vmatmul.mubr.msk.f32.vlgmr.msra.gmra.mrb[40].mxu1 %vm68_vm0, %v8898_v20 }
0x2311   :  { %7743 = vmatpush3.bf16.msra.mxu1 %v8286_v10 }
0x2312   :  { %7745 = vmatprep.subr.bf16.mxu1 %v8297_v13 }
0x2315   :  { %7747 = vmatpush3.bf16.msra.mxu1 %v8297_v13 }
0x2316   :  { %7749 = vmatprep.subr.bf16.mxu1 %v8310_v17 }
0x2319   :  { %7751 = vmatpush3.bf16.msra.mxu1 %v8310_v17 }
0x231a   :  { %7753 = vmatprep.subr.bf16.mxu1 %v8315_v19 }
0x231d   :  { %7755 = vmatpush3.bf16.msra.mxu1 %v8315_v19 }
0x231e   :  { %7781 = vmatprep.subr.bf16.mxu1 %v8251_v3 }
0x23e3   :  { %v6902_v16 = vpop.f32.mrb[40].mxu1 }
0x23e4   :  { %v3605_v18 = vadd.f32 %v8751_v50, %v6902_v16  ;;  %v3599_v32 = vpop.f32.mrb[41].mxu1 }
0x23e5   :  { %v3600_v38 = vadd.f32 %v8751_v50, %v3599_v32 }
0x23e7   :  { %8107 = vtanh.f32 %v3600_v38 }
0x23e8   :  { %8109 = vtanh.f32 %v3605_v18 }
0x23f1   :  { %v8108_v44 = vpop.eup %8107 }
0x23f2   :  { %v8110_v45 = vpop.eup %8109  ;;  %6919 = vmatprep.mubr.msk.f32.mxu1 %vm152_vm1, %v8108_v44  ;;  %v4205_v44 = vstv %s5725_s27 }
0x23f3   :  { %6920 = vmatmul.mubr.msk.f32.vlgmr.msra.gmra.mrb[42].mxu1 %vm152_vm1, %v8110_v45 }
0x23f4   :  { %7783 = vmatpush3.bf16.msra.mxu1 %v8251_v3 }
0x23f5   :  { %7785 = vmatprep.subr.bf16.mxu1 %v8261_v6 }
0x23f8   :  { %7787 = vmatpush3.bf16.msra.mxu1 %v8261_v6 }
0x23f9   :  { %7789 = vmatprep.subr.bf16.mxu1 %v8286_v10 }
0x24c6   :  { %v6921_v41 = vpop.f32.mrb[42].mxu1 }
0x24c7   :  { %v8921_v48 = vadd.f32 %v8766_v54, %v6921_v41  ;;  %v3682_v49 = vpop.f32.mrb[43].mxu1 }
0x24c8   :  { %v8924_v27 = vadd.f32 %v8766_v54, %v3682_v49 }
0x24c9   :  { %v3693_v51 = vmul.f32 %v3691_v43, %v8921_v48 }
0x24ca   :  { %v3692_v52 = vmul.f32 %v3691_v43, %v8924_v27 }
0x24cb   :  { %v3695_v55 = vadd.f32 %v3693_v51, %v8898_v20 }
0x24cc   :  { %v3694_v53 = vadd.f32 %v3692_v52, %v8895_v42 }
0x24ce   :  { %6930 = vmatprep.mubr.msk.f32.mxu0 %vm68_vm0, %v3694_v53 }
0x24cf   :  { %6931 = vmatmul.mubr.msk.f32.vlgmr.msra.gmra.mrb[40].mxu0 %vm68_vm0, %v3695_v55 }
0x24d0   :  { %7767 = vmatpush3.bf16.msra.mxu0 %v8286_v10 }
0x24d1   :  { %7769 = vmatprep.subr.bf16.mxu0 %v8297_v13 }
0x24d4   :  { %7771 = vmatpush3.bf16.msra.mxu0 %v8297_v13 }
0x24d5   :  { %7773 = vmatprep.subr.bf16.mxu0 %v8310_v17 }
0x24d8   :  { %7775 = vmatpush3.bf16.msra.mxu0 %v8310_v17 }
0x24d9   :  { %7777 = vmatprep.subr.bf16.mxu0 %v8315_v19 }
0x24dc   :  { %7779 = vmatpush3.bf16.msra.mxu0 %v8315_v19 }
0x24dd   :  { %7805 = vmatprep.subr.bf16.mxu0 %v8251_v3 }
0x25a2   :  { %v6932_v57 = vpop.f32.mrb[40].mxu0 }
0x25a3   :  { %v3774_v58 = vadd.f32 %v8751_v50, %v6932_v57  ;;  %v3768_v59 = vpop.f32.mrb[41].mxu0 }
0x25a4   :  { %v3769_v60 = vadd.f32 %v8751_v50, %v3768_v59 }
0x25a6   :  { %8111 = vtanh.f32 %v3769_v60 }
0x25a7   :  { %8113 = vtanh.f32 %v3774_v58 }
0x25b0   :  { %v8112_v46 = vpop.eup %8111 }
0x25b1   :  { %v8114_v47 = vpop.eup %8113  ;;  %6949 = vmatprep.mubr.msk.f32.mxu0 %vm152_vm1, %v8112_v46 }
0x25b2   :  { %6950 = vmatmul.mubr.msk.f32.vlgmr.msra.gmra.mrb[42].mxu0 %vm152_vm1, %v8114_v47  ;;  %v4377_v47 = vstv %s5742_s28 }
0x25b3   :  { %7807 = vmatpush3.bf16.msra.mxu0 %v8251_v3 }
0x25b4   :  { %7809 = vmatprep.subr.bf16.mxu0 %v8261_v6 }
0x25b7   :  { %7811 = vmatpush3.bf16.msra.mxu0 %v8261_v6 }
0x25b8   :  { %7813 = vmatprep.subr.bf16.mxu0 %v8286_v10 }
0x2685   :  { %v6951_v56 = vpop.f32.mrb[42].mxu0 }
0x2686   :  { %v8949_v63 = vadd.f32 %v8766_v54, %v6951_v56  ;;  %v3851_v0 = vpop.f32.mrb[43].mxu0 }
0x2687   :  { %v8952_v1 = vadd.f32 %v8766_v54, %v3851_v0 }
0x2688   :  { %v3861_v2 = vmul.f32 %v8949_v63, %v3691_v43 }
0x2689   :  { %v3860_v8 = vmul.f32 %v8952_v1, %v3691_v43 }
0x268a   :  { %v3863_v12 = vadd.f32 %v3861_v2, %v8898_v20 }
0x268b   :  { %v3862_v11 = vadd.f32 %v3860_v8, %v8895_v42 }
0x268d   :  { %6960 = vmatprep.mubr.msk.f32.mxu1 %vm68_vm0, %v3862_v11 }
0x268e   :  { %6961 = vmatmul.mubr.msk.f32.vlgmr.msra.gmra.mrb[44].mxu1 %vm68_vm0, %v3863_v12 }
0x268f   :  { %7791 = vmatpush3.bf16.msra.mxu1 %v8286_v10 }
0x2690   :  { %7793 = vmatprep.subr.bf16.mxu1 %v8297_v13 }
0x2693   :  { %7795 = vmatpush3.bf16.msra.mxu1 %v8297_v13 }
0x2694   :  { %7797 = vmatprep.subr.bf16.mxu1 %v8310_v17 }
0x2697   :  { %7799 = vmatpush3.bf16.msra.mxu1 %v8310_v17 }
0x2698   :  { %7801 = vmatprep.subr.bf16.mxu1 %v8315_v19 }
0x269b   :  { %7803 = vmatpush3.bf16.msra.mxu1 %v8315_v19 }
0x269c   :  { %7829 = vmatprep.subr.bf16.mxu1 %v8251_v3 }
0x2761   :  { %v6962_v14 = vpop.f32.mrb[44].mxu1 }
0x2762   :  { %v3942_v15 = vadd.f32 %v8751_v50, %v6962_v14  ;;  %v3936_v61 = vpop.f32.mrb[45].mxu1 }
0x2763   :  { %v3937_v62 = vadd.f32 %v8751_v50, %v3936_v61 }
0x2765   :  { %8115 = vtanh.f32 %v3937_v62 }
0x2766   :  { %8117 = vtanh.f32 %v3942_v15 }
0x276f   :  { %v8116_v4 = vpop.eup %8115 }
0x2770   :  { %v8118_v9 = vpop.eup %8117  ;;  %6979 = vmatprep.mubr.msk.f32.mxu1 %vm152_vm1, %v8116_v4 }
0x2771   :  { %6980 = vmatmul.mubr.msk.f32.vlgmr.msra.gmra.mrb[46].mxu1 %vm152_vm1, %v8118_v9 }
0x2772   :  { %7831 = vmatpush3.bf16.msra.mxu1 %v8251_v3 }
0x2773   :  { %7833 = vmatprep.subr.bf16.mxu1 %v8261_v6 }
0x2776   :  { %7835 = vmatpush3.bf16.msra.mxu1 %v8261_v6 }
0x2777   :  { %7837 = vmatprep.subr.bf16.mxu1 %v8286_v10 }
0x2844   :  { %v6981_v21 = vpop.f32.mrb[46].mxu1 }
0x2845   :  { %v4025_v23 = vadd.f32 %v8766_v54, %v6981_v21  ;;  %v4019_v24 = vpop.f32.mrb[47].mxu1 }
0x2846   :  { %v4020_v25 = vadd.f32 %v8766_v54, %v4019_v24 }
0x2847   :  { %v4030_v26 = vmul.f32 %v4028_v22, %v4025_v23  ;;  %v4198_v30 = vadd.f32 %v4025_v23, %v8949_v63 }
0x2848   :  { %v4029_v28 = vmul.f32 %v4028_v22, %v4020_v25  ;;  %v4197_v37 = vadd.f32 %v4020_v25, %v8952_v1 }
0x2849   :  { %v4032_v31 = vadd.f32 %v4030_v26, %v8898_v20  ;;  %v4200_v39 = vmul.f32 2.0, %v4198_v30 }
0x284a   :  { %v4031_v29 = vadd.f32 %v4029_v28, %v8895_v42  ;;  %v4199_v40 = vmul.f32 2.0, %v4197_v37 }
0x284b   :  { %v4202_v32 = vadd.f32 %v4200_v39, %v8921_v48 }
0x284c   :  { %6990 = vmatprep.mubr.msk.f32.mxu0 %vm68_vm0, %v4031_v29  ;;  %v4201_v41 = vadd.f32 %v4199_v40, %v8924_v27 }
0x284d   :  { %6991 = vmatmul.mubr.msk.f32.vlgmr.msra.gmra.mrb[44].mxu0 %vm68_vm0, %v4032_v31 }
0x284e   :  { %7815 = vmatpush3.bf16.msra.mxu0 %v8286_v10 }
0x284f   :  { %7817 = vmatprep.subr.bf16.mxu0 %v8297_v13 }
0x2852   :  { %7819 = vmatpush3.bf16.msra.mxu0 %v8297_v13 }
0x2853   :  { %7821 = vmatprep.subr.bf16.mxu0 %v8310_v17 }
0x2856   :  { %7823 = vmatpush3.bf16.msra.mxu0 %v8310_v17 }
0x2857   :  { %7825 = vmatprep.subr.bf16.mxu0 %v8315_v19 }
0x285a   :  { %7827 = vmatpush3.bf16.msra.mxu0 %v8315_v19 }
0x285b   :  { %7853 = vmatprep.subr.bf16.mxu0 %v8251_v3 }
0x2920   :  { %v6992_v33 = vpop.f32.mrb[44].mxu0 }
0x2921   :  { %v4111_v34 = vadd.f32 %v8751_v50, %v6992_v33  ;;  %v4105_v36 = vpop.f32.mrb[45].mxu0 }
0x2922   :  { %v4106_v35 = vadd.f32 %v8751_v50, %v4105_v36 }
0x2924   :  { %8119 = vtanh.f32 %v4106_v35 }
0x2925   :  { %8121 = vtanh.f32 %v4111_v34 }
0x292e   :  { %v8120_v5 = vpop.eup %8119 }
0x292f   :  { %v8122_v7 = vpop.eup %8121  ;;  %7009 = vmatprep.mubr.msk.f32.mxu0 %vm152_vm1, %v8120_v5 }
0x2930   :  { %7010 = vmatmul.mubr.msk.f32.vlgmr.msra.gmra.mrb[46].mxu0 %vm152_vm1, %v8122_v7  ;;  %v4714_v7 = vstv %s5743_s4 }
0x2931   :  { %7855 = vmatpush3.bf16.msra.mxu0 %v8251_v3 }
0x2932   :  { %7857 = vmatprep.subr.bf16.mxu0 %v8261_v6 }
0x2935   :  { %7859 = vmatpush3.bf16.msra.mxu0 %v8261_v6 }
0x2936   :  { %7861 = vmatprep.subr.bf16.mxu0 %v8286_v10 }
0x2a03   :  { %v7011_v16 = vpop.f32.mrb[46].mxu0 }
0x2a04   :  { %v4194_v18 = vadd.f32 %v8766_v54, %v7011_v16  ;;  %v4188_v38 = vpop.f32.mrb[47].mxu0 }
0x2a05   :  { %v4189_v45 = vadd.f32 %v8766_v54, %v4188_v38 }
0x2a06   :  { %v4204_v43 = vadd.f32 %v4202_v32, %v4194_v18 }
0x2a07   :  { %v4203_v49 = vadd.f32 %v4201_v41, %v4189_v45 }
0x2a08   :  { %v4207_v51 = vmul.f32 %v4205_v44, %v4204_v43 }
0x2a09   :  { %v4206_v52 = vmul.f32 %v4205_v44, %v4203_v49 }
0x2a0a   :  { %v9005_v53 = vadd.f32 %v4207_v51, %v8898_v20 }
0x2a0b   :  { %v9008_v55 = vadd.f32 %v4206_v52, %v8895_v42 }
0x2a0c   :  { %5584 = vrot.lane.b32.xlu1 %v9005_v53, %s8198_s2 }
0x2a0d   :  { %7020 = vmatprep.mubr.msk.f32.mxu1 %vm68_vm0, %v9008_v55 }
0x2a0e   :  { %7021 = vmatmul.mubr.msk.f32.vlgmr.msra.gmra.mrb[48].mxu1 %vm68_vm0, %v9005_v53 }
0x2a0f   :  { %7839 = vmatpush3.bf16.msra.mxu1 %v8286_v10 }
0x2a10   :  { %5582 = vrot.lane.b32.xlu1 %v9008_v55, %s8198_s2  ;;  %7841 = vmatprep.subr.bf16.mxu1 %v8297_v13  ;;  %s5615_s2 = sshll.u32 %s8201_s10, 4  ;;  %s5616_s2 = int_to_ptr.vmem [resolvable:$true] %s5615_s2 }
0x2a11   :  { %s8171_s11 = scalar_lea.vmem %s5616_s2, 512  ;;  %p8176_p6 = scmp.lt.s32.totalorder %s5616_s2, %s5616_s2 }
0x2a12   :  { %p8172_p5 = scmp.ne.s32.totalorder %s5616_s2, %s8171_s11  ;;  %p8177_p7 = scmp.lt.s32.totalorder %s8171_s11, %s8171_s11 }
0x2a13   :  { %7843 = vmatpush3.bf16.msra.mxu1 %v8297_v13 }
0x2a14   :  { %7845 = vmatprep.subr.bf16.mxu1 %v8310_v17  ;;  %p8178_p8 = por %p8177_p7, %p8176_p6 }
0x2a16   :  { %p8179_p9 = pnand %p8178_p8, %p8172_p5 }
0x2a17   :  { %7847 = vmatpush3.bf16.msra.mxu1 %v8310_v17 }
0x2a18   :  { %7849 = vmatprep.subr.bf16.mxu1 %v8315_v19 }
0x2a1b   :  { %7851 = vmatpush3.bf16.msra.mxu1 %v8315_v19 }
0x2a1c   :  { %7877 = vmatprep.subr.bf16.mxu1 %v8251_v3 }
0x2ae1   :  { %v7022_v48 = vpop.f32.mrb[48].mxu1 }
0x2ae2   :  { %v4291_v27 = vadd.f32 %v8751_v50, %v7022_v48  ;;  %v4285_v57 = vpop.f32.mrb[49].mxu1 }
0x2ae3   :  { %v4286_v58 = vadd.f32 %v8751_v50, %v4285_v57 }
0x2ae5   :  { %8123 = vtanh.f32 %v4286_v58 }
0x2ae6   :  { %8125 = vtanh.f32 %v4291_v27 }
0x2aef   :  { %v8124_v59 = vpop.eup %8123 }
0x2af0   :  { %v8126_v60 = vpop.eup %8125  ;;  %7039 = vmatprep.mubr.msk.f32.mxu1 %vm152_vm1, %v8124_v59 }
0x2af1   :  { %7040 = vmatmul.mubr.msk.f32.vlgmr.msra.gmra.mrb[50].mxu1 %vm152_vm1, %v8126_v60 }
0x2af2   :  { %7879 = vmatpush3.bf16.msra.mxu1 %v8251_v3 }
0x2af3   :  { %7881 = vmatprep.subr.bf16.mxu1 %v8261_v6 }
0x2af6   :  { %7883 = vmatpush3.bf16.msra.mxu1 %v8261_v6 }
0x2af7   :  { %7885 = vmatprep.subr.bf16.mxu1 %v8286_v10 }
0x2bc4   :  { %v7041_v46 = vpop.f32.mrb[50].mxu1 }
0x2bc5   :  { %v9035_v56 = vadd.f32 %v8766_v54, %v7041_v46  ;;  %v4368_v63 = vpop.f32.mrb[51].mxu1  ;;  %v4891_v46 = vstv %s5744_s29 }
0x2bc6   :  { %v9038_v0 = vadd.f32 %v8766_v54, %v4368_v63 }
0x2bc7   :  { %v4379_v1 = vmul.f32 %v4377_v47, %v9035_v56 }
0x2bc8   :  { %v4378_v2 = vmul.f32 %v4377_v47, %v9038_v0 }
0x2bc9   :  { %v4381_v11 = vadd.f32 %v4379_v1, %v9005_v53 }
0x2bca   :  { %v4380_v8 = vadd.f32 %v4378_v2, %v9008_v55 }
0x2bcc   :  { %7050 = vmatprep.mubr.msk.f32.mxu0 %vm68_vm0, %v4380_v8 }
0x2bcd   :  { %7051 = vmatmul.mubr.msk.f32.vlgmr.msra.gmra.mrb[48].mxu0 %vm68_vm0, %v4381_v11 }
0x2bce   :  { %7863 = vmatpush3.bf16.msra.mxu0 %v8286_v10 }
0x2bcf   :  { %7865 = vmatprep.subr.bf16.mxu0 %v8297_v13 }
0x2bd2   :  { %7867 = vmatpush3.bf16.msra.mxu0 %v8297_v13 }
0x2bd3   :  { %7869 = vmatprep.subr.bf16.mxu0 %v8310_v17 }
0x2bd6   :  { %7871 = vmatpush3.bf16.msra.mxu0 %v8310_v17 }
0x2bd7   :  { %7873 = vmatprep.subr.bf16.mxu0 %v8315_v19 }
0x2bda   :  { %7875 = vmatpush3.bf16.msra.mxu0 %v8315_v19 }
0x2bdb   :  { %7901 = vmatprep.subr.bf16.mxu0 %v8251_v3 }
0x2ca0   :  { %v7052_v12 = vpop.f32.mrb[48].mxu0 }
0x2ca1   :  { %v4460_v14 = vadd.f32 %v8751_v50, %v7052_v12  ;;  %v4454_v15 = vpop.f32.mrb[49].mxu0 }
0x2ca2   :  { %v4455_v61 = vadd.f32 %v8751_v50, %v4454_v15 }
0x2ca4   :  { %8127 = vtanh.f32 %v4455_v61 }
0x2ca5   :  { %8129 = vtanh.f32 %v4460_v14 }
0x2cae   :  { %v8128_v62 = vpop.eup %8127 }
0x2caf   :  { %v8130_v4 = vpop.eup %8129  ;;  %7069 = vmatprep.mubr.msk.f32.mxu0 %vm152_vm1, %v8128_v62 }
0x2cb0   :  { %7070 = vmatmul.mubr.msk.f32.vlgmr.msra.gmra.mrb[50].mxu0 %vm152_vm1, %v8130_v4  ;;  %v5063_v4 = vstv %s5761_s0 }
0x2cb1   :  { %7903 = vmatpush3.bf16.msra.mxu0 %v8251_v3 }
0x2cb2   :  { %7905 = vmatprep.subr.bf16.mxu0 %v8261_v6 }
0x2cb5   :  { %7907 = vmatpush3.bf16.msra.mxu0 %v8261_v6 }
0x2cb6   :  { %7909 = vmatprep.subr.bf16.mxu0 %v8286_v10 }
0x2d83   :  { %v7071_v9 = vpop.f32.mrb[50].mxu0 }
0x2d84   :  { %v9063_v21 = vadd.f32 %v8766_v54, %v7071_v9  ;;  %v4537_v22 = vpop.f32.mrb[51].mxu0 }
0x2d85   :  { %v9066_v23 = vadd.f32 %v8766_v54, %v4537_v22 }
0x2d86   :  { %v4547_v24 = vmul.f32 %v9063_v21, %v4377_v47 }
0x2d87   :  { %v4546_v25 = vmul.f32 %v9066_v23, %v4377_v47 }
0x2d88   :  { %v4549_v28 = vadd.f32 %v4547_v24, %v9005_v53 }
0x2d89   :  { %v4548_v26 = vadd.f32 %v4546_v25, %v9008_v55 }
0x2d8b   :  { %7080 = vmatprep.mubr.msk.f32.mxu1 %vm68_vm0, %v4548_v26  ;;  %v9171_v26 = vld [vmem:[%s9251_s3] ss:$0 sm:$0xff] }
0x2d8c   :  { %7081 = vmatmul.mubr.msk.f32.vlgmr.msra.gmra.mrb[52].mxu1 %vm68_vm0, %v4549_v28 }
0x2d8d   :  { %7887 = vmatpush3.bf16.msra.mxu1 %v8286_v10 }
0x2d8e   :  { %7889 = vmatprep.subr.bf16.mxu1 %v8297_v13 }
0x2d91   :  { %7891 = vmatpush3.bf16.msra.mxu1 %v8297_v13 }
0x2d92   :  { %7893 = vmatprep.subr.bf16.mxu1 %v8310_v17 }
0x2d95   :  { %7895 = vmatpush3.bf16.msra.mxu1 %v8310_v17 }
0x2d96   :  { %7897 = vmatprep.subr.bf16.mxu1 %v8315_v19 }
0x2d99   :  { %7899 = vmatpush3.bf16.msra.mxu1 %v8315_v19 }
0x2d9a   :  { %7925 = vmatprep.subr.bf16.mxu1 %v8251_v3 }
0x2e5f   :  { %v7082_v29 = vpop.f32.mrb[52].mxu1 }
0x2e60   :  { %v4628_v31 = vadd.f32 %v8751_v50, %v7082_v29  ;;  %v4622_v33 = vpop.f32.mrb[53].mxu1 }
0x2e61   :  { %v4623_v34 = vadd.f32 %v8751_v50, %v4622_v33 }
0x2e63   :  { %8131 = vtanh.f32 %v4623_v34 }
0x2e64   :  { %8133 = vtanh.f32 %v4628_v31 }
0x2e6d   :  { %v8132_v36 = vpop.eup %8131 }
0x2e6e   :  { %v8134_v35 = vpop.eup %8133  ;;  %7099 = vmatprep.mubr.msk.f32.mxu1 %vm152_vm1, %v8132_v36 }
0x2e6f   :  { %7100 = vmatmul.mubr.msk.f32.vlgmr.msra.gmra.mrb[54].mxu1 %vm152_vm1, %v8134_v35  ;;  %v9184_v35 = vld [vmem:[%s9253_s5] ss:$0 sm:$0xff]  ;;  %s5762_s5 = sld [smem:[#allocation2 + $0x16]] }
0x2e70   :  { %7927 = vmatpush3.bf16.msra.mxu1 %v8251_v3 }
0x2e71   :  { %7929 = vmatprep.subr.bf16.mxu1 %v8261_v6 }
0x2e74   :  { %7931 = vmatpush3.bf16.msra.mxu1 %v8261_v6 }
0x2e75   :  { %7933 = vmatprep.subr.bf16.mxu1 %v8286_v10 }
0x2f42   :  { %v7101_v5 = vpop.f32.mrb[54].mxu1 }
0x2f43   :  { %v4711_v30 = vadd.f32 %v8766_v54, %v7101_v5  ;;  %v4705_v37 = vpop.f32.mrb[55].mxu1 }
0x2f44   :  { %v4706_v39 = vadd.f32 %v8766_v54, %v4705_v37 }
0x2f45   :  { %v4716_v40 = vmul.f32 %v4714_v7, %v4711_v30  ;;  %v4884_v51 = vadd.f32 %v4711_v30, %v9063_v21 }
0x2f46   :  { %v4715_v16 = vmul.f32 %v4714_v7, %v4706_v39  ;;  %v4883_v52 = vadd.f32 %v4706_v39, %v9066_v23 }
0x2f47   :  { %v4718_v32 = vadd.f32 %v4716_v40, %v9005_v53  ;;  %v4886_v48 = vmul.f32 2.0, %v4884_v51 }
0x2f48   :  { %v4717_v18 = vadd.f32 %v4715_v16, %v9008_v55  ;;  %v4885_v27 = vmul.f32 2.0, %v4883_v52 }
0x2f49   :  { %v4888_v59 = vadd.f32 %v4886_v48, %v9035_v56 }
0x2f4a   :  { %7110 = vmatprep.mubr.msk.f32.mxu0 %vm68_vm0, %v4717_v18  ;;  %v4887_v63 = vadd.f32 %v4885_v27, %v9038_v0 }
0x2f4b   :  { %7111 = vmatmul.mubr.msk.f32.vlgmr.msra.gmra.mrb[52].mxu0 %vm68_vm0, %v4718_v32 }
0x2f4c   :  { %7911 = vmatpush3.bf16.msra.mxu0 %v8286_v10 }
0x2f4d   :  { %7913 = vmatprep.subr.bf16.mxu0 %v8297_v13 }
0x2f50   :  { %7915 = vmatpush3.bf16.msra.mxu0 %v8297_v13 }
0x2f51   :  { %7917 = vmatprep.subr.bf16.mxu0 %v8310_v17 }
0x2f54   :  { %7919 = vmatpush3.bf16.msra.mxu0 %v8310_v17 }
0x2f55   :  { %7921 = vmatprep.subr.bf16.mxu0 %v8315_v19 }
0x2f58   :  { %7923 = vmatpush3.bf16.msra.mxu0 %v8315_v19 }
0x2f59   :  { %7949 = vmatprep.subr.bf16.mxu0 %v8251_v3 }
0x301e   :  { %v7112_v38 = vpop.f32.mrb[52].mxu0 }
0x301f   :  { %v4797_v44 = vadd.f32 %v8751_v50, %v7112_v38  ;;  %v4791_v45 = vpop.f32.mrb[53].mxu0 }
0x3020   :  { %v4792_v41 = vadd.f32 %v8751_v50, %v4791_v45 }
0x3022   :  { %8135 = vtanh.f32 %v4792_v41  ;;  %v5400_v41 = vstv %s5762_s5 }
0x3023   :  { %8137 = vtanh.f32 %v4797_v44 }
0x302c   :  { %v8136_v43 = vpop.eup %8135 }
0x302d   :  { %v8138_v49 = vpop.eup %8137  ;;  %7129 = vmatprep.mubr.msk.f32.mxu0 %vm152_vm1, %v8136_v43 }
0x302e   :  { %7130 = vmatmul.mubr.msk.f32.vlgmr.msra.gmra.mrb[54].mxu0 %vm152_vm1, %v8138_v49 }
0x302f   :  { %7951 = vmatpush3.bf16.msra.mxu0 %v8251_v3 }
0x3030   :  { %7953 = vmatprep.subr.bf16.mxu0 %v8261_v6 }
0x3033   :  { %7955 = vmatpush3.bf16.msra.mxu0 %v8261_v6 }
0x3034   :  { %7957 = vmatprep.subr.bf16.mxu0 %v8286_v10 }
0x3101   :  { %v7131_v57 = vpop.f32.mrb[54].mxu0 }
0x3102   :  { %v4880_v58 = vadd.f32 %v8766_v54, %v7131_v57  ;;  %v4874_v60 = vpop.f32.mrb[55].mxu0 }
0x3103   :  { %v4875_v47 = vadd.f32 %v8766_v54, %v4874_v60 }
0x3104   :  { %v4890_v1 = vadd.f32 %v4888_v59, %v4880_v58 }
0x3105   :  { %v4889_v2 = vadd.f32 %v4887_v63, %v4875_v47 }
0x3106   :  { %v4893_v8 = vmul.f32 %v4891_v46, %v4890_v1 }
0x3107   :  { %v4892_v11 = vmul.f32 %v4891_v46, %v4889_v2 }
0x3108   :  { %v9119_v12 = vadd.f32 %v4893_v8, %v9005_v53 }
0x3109   :  { %v9122_v14 = vadd.f32 %v4892_v11, %v9008_v55 }
0x310a   :  { %5590 = vrot.lane.b32.xlu1 %v9119_v12, %s8199_s14 }
0x310b   :  { %5588 = vrot.lane.b32.xlu0 %v9122_v14, %s8199_s14  ;;  %7140 = vmatprep.mubr.msk.f32.mxu1 %vm68_vm0, %v9122_v14 }
0x310c   :  { %7141 = vmatmul.mubr.msk.f32.vlgmr.msra.gmra.mrb[56].mxu1 %vm68_vm0, %v9119_v12 }
0x310d   :  { %7935 = vmatpush3.bf16.msra.mxu1 %v8286_v10 }
0x310e   :  { %7937 = vmatprep.subr.bf16.mxu1 %v8297_v13 }
0x3111   :  { %7939 = vmatpush3.bf16.msra.mxu1 %v8297_v13 }
0x3112   :  { %7941 = vmatprep.subr.bf16.mxu1 %v8310_v17 }
0x3115   :  { %7943 = vmatpush3.bf16.msra.mxu1 %v8310_v17 }
0x3116   :  { %7945 = vmatprep.subr.bf16.mxu1 %v8315_v19 }
0x3119   :  { %7947 = vmatpush3.bf16.msra.mxu1 %v8315_v19 }
0x311a   :  { %7973 = vmatprep.subr.bf16.mxu1 %v8251_v3 }
0x31df   :  { %v7142_v53 = vpop.f32.mrb[56].mxu1 }
0x31e0   :  { %v4977_v55 = vadd.f32 %v8751_v50, %v7142_v53  ;;  %v4971_v56 = vpop.f32.mrb[57].mxu1  ;;  %v5577_v53 = vstv %s5763_s9 }
0x31e1   :  { %v4972_v0 = vadd.f32 %v8751_v50, %v4971_v56 }
0x31e3   :  { %8139 = vtanh.f32 %v4972_v0 }
0x31e4   :  { %8141 = vtanh.f32 %v4977_v55 }
0x31ed   :  { %v8140_v15 = vpop.eup %8139 }
0x31ee   :  { %v8142_v61 = vpop.eup %8141  ;;  %7159 = vmatprep.mubr.msk.f32.mxu1 %vm152_vm1, %v8140_v15 }
0x31ef   :  { %7160 = vmatmul.mubr.msk.f32.vlgmr.msra.gmra.mrb[58].mxu1 %vm152_vm1, %v8142_v61 }
0x31f0   :  { %7975 = vmatpush3.bf16.msra.mxu1 %v8251_v3 }
0x31f1   :  { %7977 = vmatprep.subr.bf16.mxu1 %v8261_v6 }
0x31f4   :  { %7979 = vmatpush3.bf16.msra.mxu1 %v8261_v6 }
0x31f5   :  { %7981 = vmatprep.subr.bf16.mxu1 %v8286_v10 }
0x32c2   :  { %v7161_v62 = vpop.f32.mrb[58].mxu1 }
0x32c3   :  { %v9149_v50 = vadd.f32 %v8766_v54, %v7161_v62  ;;  %v5054_v9 = vpop.f32.mrb[59].mxu1 }
0x32c4   :  { %v9152_v21 = vadd.f32 %v8766_v54, %v5054_v9 }
0x32c5   :  { %v5065_v22 = vmul.f32 %v5063_v4, %v9149_v50 }
0x32c6   :  { %v5064_v23 = vmul.f32 %v5063_v4, %v9152_v21 }
0x32c7   :  { %v5067_v25 = vadd.f32 %v5065_v22, %v9119_v12  ;;  %v5585_v22 = vpop.permute.xlu1 %5584 }
0x32c8   :  { %v5066_v24 = vadd.f32 %v5064_v23, %v9122_v14 }
0x32ca   :  { %7170 = vmatprep.mubr.msk.f32.mxu0 %vm68_vm0, %v5066_v24  ;;  %v5589_v24 = vpop.permute.xlu0 %5588 }
0x32cb   :  { %7171 = vmatmul.mubr.msk.f32.vlgmr.msra.gmra.mrb[56].mxu0 %vm68_vm0, %v5067_v25 }
0x32cc   :  { %7959 = vmatpush3.bf16.msra.mxu0 %v8286_v10 }
0x32cd   :  { %7961 = vmatprep.subr.bf16.mxu0 %v8297_v13 }
0x32d0   :  { %7963 = vmatpush3.bf16.msra.mxu0 %v8297_v13 }
0x32d1   :  { %7965 = vmatprep.subr.bf16.mxu0 %v8310_v17 }
0x32d4   :  { %7967 = vmatpush3.bf16.msra.mxu0 %v8310_v17 }
0x32d5   :  { %7969 = vmatprep.subr.bf16.mxu0 %v8315_v19 }
0x32d8   :  { %7971 = vmatpush3.bf16.msra.mxu0 %v8315_v19 }
0x32d9   :  { %7997 = vmatprep.subr.bf16.mxu0 %v8251_v3 }
0x339e   :  { %v7172_v54 = vpop.f32.mrb[56].mxu0 }
0x339f   :  { %v5146_v28 = vadd.f32 %v9171_v26, %v7172_v54  ;;  %v5140_v29 = vpop.f32.mrb[57].mxu0 }
0x33a0   :  { %v5141_v31 = vadd.f32 %v9171_v26, %v5140_v29 }
0x33a2   :  { %8143 = vtanh.f32 %v5141_v31 }
0x33a3   :  { %8145 = vtanh.f32 %v5146_v28 }
0x33ac   :  { %v8144_v33 = vpop.eup %8143 }
0x33ad   :  { %v8146_v34 = vpop.eup %8145  ;;  %7189 = vmatprep.mubr.msk.f32.mxu0 %vm152_vm1, %v8144_v33 }
0x33ae   :  { %7190 = vmatmul.mubr.msk.f32.vlgmr.msra.gmra.mrb[58].mxu0 %vm152_vm1, %v8146_v34 }
0x33af   :  { %7999 = vmatpush3.bf16.msra.mxu0 %v8251_v3 }
0x33b0   :  { %8001 = vmatprep.subr.bf16.mxu0 %v8261_v6 }
0x33b3   :  { %8003 = vmatpush3.bf16.msra.mxu0 %v8261_v6 }
0x33b4   :  { %8005 = vmatprep.subr.bf16.mxu0 %v8286_v10 }
0x3481   :  { %v7191_v36 = vpop.f32.mrb[58].mxu0 }
0x3482   :  { %v5229_v5 = vadd.f32 %v9184_v35, %v7191_v36  ;;  %v5223_v7 = vpop.f32.mrb[59].mxu0 }
0x3483   :  { %v5224_v30 = vadd.f32 %v9184_v35, %v5223_v7 }
0x3484   :  { %v5233_v37 = vmul.f32 %v5229_v5, %v5063_v4 }
0x3485   :  { %v5232_v39 = vmul.f32 %v5224_v30, %v5063_v4 }
0x3486   :  { %v5235_v40 = vadd.f32 %v5233_v37, %v9119_v12 }
0x3487   :  { %v5234_v3 = vadd.f32 %v5232_v39, %v9122_v14 }
0x3489   :  { %7200 = vmatprep.mubr.msk.f32.mxu1 %vm68_vm0, %v5234_v3 }
0x348a   :  { %7201 = vmatmul.mubr.msk.f32.vlgmr.msra.gmra.mrb[60].mxu1 %vm68_vm0, %v5235_v40 }
0x348b   :  { %7983 = vmatpush3.bf16.msra.mxu1 %v8286_v10 }
0x348c   :  { %7985 = vmatprep.subr.bf16.mxu1 %v8297_v13 }
0x348f   :  { %7987 = vmatpush3.bf16.msra.mxu1 %v8297_v13 }
0x3490   :  { %7989 = vmatprep.subr.bf16.mxu1 %v8310_v17 }
0x3493   :  { %7991 = vmatpush3.bf16.msra.mxu1 %v8310_v17 }
0x3494   :  { %7993 = vmatprep.subr.bf16.mxu1 %v8315_v19 }
0x3497   :  { %7995 = vmatpush3.bf16.msra.mxu1 %v8315_v19 }
0x355d   :  { %v7202_v6 = vpop.f32.mrb[60].mxu1 }
0x355e   :  { %v5314_v16 = vadd.f32 %v9171_v26, %v7202_v6  ;;  %v5308_v18 = vpop.f32.mrb[61].mxu1 }
0x355f   :  { %v5309_v32 = vadd.f32 %v9171_v26, %v5308_v18 }
0x3561   :  { %8147 = vtanh.f32 %v5309_v32 }
0x3562   :  { %8149 = vtanh.f32 %v5314_v16 }
0x356b   :  { %v8148_v38 = vpop.eup %8147 }
0x356c   :  { %v8150_v44 = vpop.eup %8149  ;;  %7219 = vmatprep.mubr.msk.f32.mxu1 %vm152_vm1, %v8148_v38 }
0x356d   :  { %7220 = vmatmul.mubr.msk.f32.vlgmr.msra.gmra.mrb[62].mxu1 %vm152_vm1, %v8150_v44 }
0x3640   :  { %v7221_v45 = vpop.f32.mrb[62].mxu1 }
0x3641   :  { %v5397_v43 = vadd.f32 %v9184_v35, %v7221_v45  ;;  %v5391_v49 = vpop.f32.mrb[63].mxu1 }
0x3642   :  { %v5392_v51 = vadd.f32 %v9184_v35, %v5391_v49 }
0x3643   :  { %v5402_v52 = vmul.f32 %v5400_v41, %v5397_v43 }
0x3644   :  { %v5401_v48 = vmul.f32 %v5400_v41, %v5392_v51 }
0x3645   :  { %v5404_v57 = vadd.f32 %v5402_v52, %v9119_v12 }
0x3646   :  { %v5403_v27 = vadd.f32 %v5401_v48, %v9122_v14 }
0x3648   :  { %7230 = vmatprep.mubr.msk.f32.mxu0 %vm68_vm0, %v5403_v27 }
0x3649   :  { %7231 = vmatmul.mubr.msk.f32.vlgmr.msra.gmra.mrb[60].mxu0 %vm68_vm0, %v5404_v57 }
0x364a   :  { %8007 = vmatpush3.bf16.msra.mxu0 %v8286_v10 }
0x364b   :  { %8009 = vmatprep.subr.bf16.mxu0 %v8297_v13 }
0x364e   :  { %8011 = vmatpush3.bf16.msra.mxu0 %v8297_v13  ;;  %v5570_v13 = vadd.f32 %v5397_v43, %v5229_v5 }
0x364f   :  { %8013 = vmatprep.subr.bf16.mxu0 %v8310_v17 }
0x3650   :  { %v5572_v63 = vmul.f32 2.0, %v5570_v13 }
0x3652   :  { %8015 = vmatpush3.bf16.msra.mxu0 %v8310_v17  ;;  %v5569_v17 = vadd.f32 %v5392_v51, %v5224_v30  ;;  %v5574_v8 = vadd.f32 %v5572_v63, %v9149_v50  ;;  %v5583_v50 = vpop.permute.xlu1 %5582 }
0x3653   :  { %8017 = vmatprep.subr.bf16.mxu0 %v8315_v19  ;;  %v5602_v25 = vsel %vm68_vm0, %v8895_v42, %v5583_v50 }
0x3654   :  { %v5571_v1 = vmul.f32 2.0, %v5569_v17 }
0x3656   :  { %8019 = vmatpush3.bf16.msra.mxu0 %v8315_v19  ;;  %v5573_v56 = vadd.f32 %v5571_v1, %v9152_v21  ;;  %v5591_v23 = vpop.permute.xlu1 %5590  ;;  %v5603_v21 = vsel %vm68_vm0, %v8898_v20, %v5585_v22 }
0x371c   :  { %v7232_v58 = vpop.f32.mrb[60].mxu0 }
0x371d   :  { %v5483_v59 = vadd.f32 %v9171_v26, %v7232_v58  ;;  %v5477_v60 = vpop.f32.mrb[61].mxu0 }
0x371e   :  { %v5478_v46 = vadd.f32 %v9171_v26, %v5477_v60 }
0x3720   :  { %8151 = vtanh.f32 %v5478_v46 }
0x3721   :  { %8153 = vtanh.f32 %v5483_v59 }
0x372a   :  { %v8152_v10 = vpop.eup %8151 }
0x372b   :  { %v8154_v47 = vpop.eup %8153  ;;  %7249 = vmatprep.mubr.msk.f32.mxu0 %vm152_vm1, %v8152_v10 }
0x372c   :  { %7250 = vmatmul.mubr.msk.f32.vlgmr.msra.gmra.mrb[62].mxu0 %vm152_vm1, %v8154_v47 }
0x37ff   :  { %v7251_v19 = vpop.f32.mrb[62].mxu0 }
0x3800   :  { %v5566_v2 = vadd.f32 %v9184_v35, %v7251_v19  ;;  %v5560_v11 = vpop.f32.mrb[63].mxu0 }
0x3801   :  { %v5561_v55 = vadd.f32 %v9184_v35, %v5560_v11 }
0x3802   :  { %v5576_v0 = vadd.f32 %v5574_v8, %v5566_v2 }
0x3803   :  { %v5575_v15 = vadd.f32 %v5573_v56, %v5561_v55 }
0x3804   :  { %v5579_v61 = vmul.f32 %v5577_v53, %v5576_v0 }
0x3805   :  { %v5578_v62 = vmul.f32 %v5577_v53, %v5575_v15 }
0x3806   :  { %v5581_v4 = vadd.f32 %v5579_v61, %v9119_v12  ;;  %v5605_v12 = vsel %vm152_vm1, %v5603_v21, %v5591_v23 }
0x3807   :  { %v5580_v9 = vadd.f32 %v5578_v62, %v9122_v14  ;;  %v5604_v14 = vsel %vm152_vm1, %v5602_v25, %v5589_v24 }
0x3808   :  { %5598 = vrot.lane.b32.xlu1 %v5581_v4, %s8200_s21 }
0x3809   :  { %5596 = vrot.lane.b32.xlu0 %v5580_v9, %s8200_s21 }
0x387a   :  { %v5599_v54 = vpop.permute.xlu1 %5598 }
0x387b   :  { %v5607_v26 = vsel %vm2835_vm2, %v5605_v12, %v5599_v54  ;;  %v5597_v28 = vpop.permute.xlu0 %5596 }
0x387c   :  { %5609 = vst [vmem:[#allocation5 + $0x18] sm:$0xff] %v5607_v26  ;;  %v5606_v29 = vsel %vm2835_vm2, %v5604_v14, %v5597_v28 }
0x387d   :  { %5608 = vst [vmem:[#allocation5 + $0x8] sm:$0xff] %v5606_v29 }
0x387e   :  { %8182 = shalt.err (!%p8179_p9)
}
0x387f   :  { %s8183_s14 = scalar_lea.hbm %s9254_s6, 512 }
0x3880   :  { %p8184_p10 = scmp.ne.s32.totalorder %s9254_s6, %s8183_s14  ;;  %p8187_p11 = scmp.lt.u32.totalorder %s8183_s14, %s9254_s6 }
0x3882   :  { %p8189_p12 = pnand %p8187_p11, %p8184_p10 }
0x3884   :  { %8192 = shalt.err (!%p8189_p12)
}
0x3885   :  { %s8202_s18 = smov 256   ;;  %s8203_s19 = smov 16  }
0x3886   :  { %5621 = dma.vmem_to_hbm [thread:$0]  %s5616_s2, 512, %s9254_s6, [#allocation3], %s8202_s18, %s8202_s18, %s8203_s19  }
0x3887   :  { %8195 = dma.done.wait [#allocation3], 512  }
0x3888   :  { %8196 = vsyncadd [#allocation3], 4294966784 }
0x3889   :  { %5625 = vsyncpa [#allocation3], 1 }
0x388a   :  { %5626 = vsyncpa [#allocation4], 1 }

</bundles_post_ra>
